<compile_context>
chip_gen: v6e
topology: v6e:2x2x1
jax: 0.10.0
libtpu: 0.0.40
codegen_flags: <defaults>
</compile_context>

<pallas_src>
import math
import functools

import jax
import jax.numpy as jnp
from jax.experimental import pallas as pl
from jax.experimental.pallas import tpu as pltpu


def encoder_kernel(x_ref, mask_ref, hm_ref,
                   wqkv_ref, bqkv_ref, wo_ref, bo_ref,
                   w1_ref, b1_ref, w2_ref, b2_ref,
                   g1_ref, be1_ref, g2_ref, be2_ref,
                   out_ref, attn_ref,
                   *, n_head: int, batch: int, seq: int):
    """One grid step == one full encoder layer; grid axis 0 iterates layers."""
    l = pl.program_id(0)

    # Layer 0 consumes the kernel input; afterwards the activation lives in the
    # resident output block (constant index_map => stays in VMEM across layers).
    @pl.when(l == 0)
    def _():
        out_ref[...] = x_ref[...]

    x = out_ref[...]                                   # (B*S, D) carried activation
    D = x.shape[-1]
    H = n_head
    dh = D // H
    scale = 1.0 / math.sqrt(dh)

    # ---- fused Q/K/V projection: one MXU pass with N = 3*D ----------------
    qkv = jnp.dot(x, wqkv_ref[0], preferred_element_type=jnp.float32) + bqkv_ref[0]
    q = qkv[:, :D] * scale          # fold 1/sqrt(dh) into q (one VPU multiply)
    k = qkv[:, D:2 * D]
    v = qkv[:, 2 * D:]

    # ---- multi-head attention as two batched 3-D contractions -------------
    # hm[h, :, d] == 1 iff column d belongs to head h.  Masking q/k/v with it
    # and contracting over the full D gives exact per-head scores / contexts
    # without any lane-unaligned slicing, transposes or concatenations.
    hm = hm_ref[...]                                   # (H, S, D) 0/1 selector
    q4 = q.reshape(batch, 1, seq, D) * hm[None]        # (B, H, S, D)
    k4 = k.reshape(batch, 1, seq, D) * hm[None]        # (B, H, S, D)
    v4 = v.reshape(batch, 1, seq, D) * hm[None]        # (B, H, S, D)
    qn = q4.reshape(batch * H, seq, D)
    kn = k4.reshape(batch * H, seq, D)
    vn = v4.reshape(batch * H, seq, D)

    # scores[b*H+h, q, k] = scale * sum_{d in head h} q[b,q,d] * k[b,k,d]
    scores = jnp.einsum('nqd,nkd->nqk', qn, kn,
                        preferred_element_type=jnp.float32)          # (B*H, S, S)
    scores = scores.reshape(batch, H, seq, seq) + mask_ref[...][:, None, :, :]

    m = jnp.max(scores, axis=-1, keepdims=True)
    e = jnp.exp(scores - m)
    probs = e * pl.reciprocal(jnp.sum(e, axis=-1, keepdims=True), approx=True)

    # Only the last layer's attention is observable: single whole-block store,
    # single HBM writeback for the entire stack.
    @pl.when(l == pl.num_programs(0) - 1)
    def _():
        attn_ref[...] = probs                          # (B, H, S, S)

    # Per-head context in that head's D-columns (other columns are zero thanks
    # to the head mask on v); summing over H concatenates the heads.
    ctx = jnp.einsum('nqk,nkd->nqd', probs.reshape(batch * H, seq, seq), vn,
                     preferred_element_type=jnp.float32)             # (B*H, S, D)
    ctx = ctx.reshape(batch, H, seq, D)
    ctx_sum = ctx[:, 0]
    for h in range(1, H):                              # H-1 cheap vector adds
        ctx_sum = ctx_sum + ctx[:, h]
    ctx2 = ctx_sum.reshape(batch * seq, D)             # == concat over heads

    attn_out = jnp.dot(ctx2, wo_ref[0], preferred_element_type=jnp.float32) + bo_ref[0]

    # ---- add & LayerNorm 1 (eps=1e-12, biased variance; torch semantics) ---
    h1 = x + attn_out
    mu1 = jnp.mean(h1, axis=-1, keepdims=True)
    var1 = jnp.mean((h1 - mu1) ** 2, axis=-1, keepdims=True)
    h1n = (h1 - mu1) * jax.lax.rsqrt(var1 + 1e-12) * g1_ref[0] + be1_ref[0]

    # ---- position-wise feed-forward with ReLU ------------------------------
    inter = jnp.dot(h1n, w1_ref[0], preferred_element_type=jnp.float32) + b1_ref[0]
    inter = jnp.maximum(inter, 0.0)
    ffn = jnp.dot(inter, w2_ref[0], preferred_element_type=jnp.float32) + b2_ref[0]

    # ---- add & LayerNorm 2 --------------------------------------------------
    h2 = h1n + ffn
    mu2 = jnp.mean(h2, axis=-1, keepdims=True)
    var2 = jnp.mean((h2 - mu2) ** 2, axis=-1, keepdims=True)
    out_ref[...] = (h2 - mu2) * jax.lax.rsqrt(var2 + 1e-12) * g2_ref[0] + be2_ref[0]


def encoder_forward(x, mask, layer_params, n_head):
    """Encoder.forward: all layers fused into one pallas_call.

    Returns (final hidden [B,S,D], last layer's attention probs [B,H,S,S]).
    """
    B, S, D = x.shape
    H = n_head
    dh = D // H
    L = len(layer_params)

    # ---- stack per-layer weights with a leading layer dim; fuse q|k|v ------
    stack = lambda name: jnp.stack([p[name] for p in layer_params], axis=0)
    wqkv = jnp.stack([jnp.concatenate([p["wq"], p["wk"], p["wv"]], axis=1)
                      for p in layer_params], axis=0)              # (L, D, 3D)
    bqkv = jnp.stack([jnp.concatenate([p["bq"], p["bk"], p["bv"]], axis=1)
                      for p in layer_params], axis=0)              # (L, 1, 3D)
    wo, bo = stack("wo"), stack("bo")
    w1, b1 = stack("w1"), stack("b1")
    w2, b2 = stack("w2"), stack("b2")
    g1, be1, g2, be2 = stack("g1"), stack("be1"), stack("g2"), stack("be2")

    # 0/1 head-column selector, (H, S, D): hm[h, :, d] = 1 iff d in head h.
    col_head = jnp.arange(D, dtype=jnp.int32) // dh
    hm2 = (col_head[None, :] == jnp.arange(H, dtype=jnp.int32)[:, None]).astype(jnp.float32)
    hm = jnp.broadcast_to(hm2[:, None, :], (H, S, D)).astype(jnp.float32)

    x2 = x.reshape(B * S, D)

    def layer_spec(arr):
        nz = (0,) * (arr.ndim - 1)
        return pl.BlockSpec((1,) + arr.shape[1:], lambda l, _z=nz: (l,) + _z)

    def const_spec(shape):
        z = (0,) * len(shape)
        return pl.BlockSpec(shape, lambda l, _z=z: _z)

    in_specs = [
        const_spec((B * S, D)),      # x (flattened batch)
        const_spec((B, S, S)),       # additive attention mask
        const_spec((H, S, D)),       # head-column selector
        layer_spec(wqkv), layer_spec(bqkv),
        layer_spec(wo), layer_spec(bo),
        layer_spec(w1), layer_spec(b1),
        layer_spec(w2), layer_spec(b2),
        layer_spec(g1), layer_spec(be1),
        layer_spec(g2), layer_spec(be2),
    ]
    out_specs = [
        const_spec((B * S, D)),          # carried activation / final hidden
        const_spec((B, H, S, S)),        # last layer's attention probs
    ]
    out_shape = [
        jax.ShapeDtypeStruct((B * S, D), jnp.float32),
        jax.ShapeDtypeStruct((B, H, S, S), jnp.float32),
    ]

    kernel = functools.partial(encoder_kernel, n_head=H, batch=B, seq=S)
    y, attn = pl.pallas_call(
        kernel,
        grid=(L,),
        in_specs=in_specs,
        out_specs=out_specs,
        out_shape=out_shape,
        compiler_params=pltpu.CompilerParams(
            dimension_semantics=("arbitrary",)),   # layers are sequential (carried state)
    )(x2, mask, hm, wqkv, bqkv, wo, bo, w1, b1, w2, b2, g1, be1, g2, be2)

    return y.reshape(B, S, D), attn


def init_layer_params(key, d_model, d_ff):
    ks = jax.random.split(key, 6)
    n = lambda k, shape: (0.02 * jax.random.normal(k, shape)).astype(jnp.float32)
    D, F = d_model, d_ff
    return {
        "wq": n(ks[0], (D, D)), "bq": jnp.zeros((1, D), jnp.float32),
        "wk": n(ks[1], (D, D)), "bk": jnp.zeros((1, D), jnp.float32),
        "wv": n(ks[2], (D, D)), "bv": jnp.zeros((1, D), jnp.float32),
        "wo": n(ks[3], (D, D)), "bo": jnp.zeros((1, D), jnp.float32),
        "w1": n(ks[4], (D, F)), "b1": jnp.zeros((1, F), jnp.float32),
        "w2": n(ks[5], (F, D)), "b2": jnp.zeros((1, D), jnp.float32),
        "g1": jnp.ones((1, D), jnp.float32), "be1": jnp.zeros((1, D), jnp.float32),
        "g2": jnp.ones((1, D), jnp.float32), "be2": jnp.zeros((1, D), jnp.float32),
    }


if __name__ == "__main__":
    # Small shapes consistent with the module: B=2, S=8, d_model=32, nhead=4, d_ff=64, 2 layers.
    B, S, D, H, F, L = 2, 8, 32, 4, 64, 2

    root = jax.random.PRNGKey(0)
    k_x, k_layers = jax.random.split(root)
    x = jax.random.normal(k_x, (B, S, D), dtype=jnp.float32)

    # Additive attention mask [B, S, S]: mask out the last key position of batch 1.
    mask = jnp.zeros((B, S, S), jnp.float32)
    mask = mask.at[1, :, -1].set(-1e9)

    layer_keys = jax.random.split(k_layers, L)
    layer_params = [init_layer_params(layer_keys[i], D, F) for i in range(L)]

    out, attn = encoder_forward(x, mask, layer_params, H)
    out = jax.block_until_ready(out)
    attn = jax.block_until_ready(attn)

    assert out.shape == (B, S, D)
    assert attn.shape == (B, H, S, S)
    assert bool(jnp.all(jnp.isfinite(out))) and bool(jnp.all(jnp.isfinite(attn)))
    print("KERNEL_OK")
</pallas_src>

<mosaic_0001>
module attributes {stable_mosaic.version = 11 : i64} {
  func.func @encoder_kernel(%arg0: i32, %arg1: memref<16x32xf32, #tpu.memory_space<vmem>>, %arg2: memref<2x8x8xf32, #tpu.memory_space<vmem>>, %arg3: memref<4x8x32xf32, #tpu.memory_space<vmem>>, %arg4: memref<1x32x96xf32, #tpu.memory_space<vmem>>, %arg5: memref<1x1x96xf32, #tpu.memory_space<vmem>>, %arg6: memref<1x32x32xf32, #tpu.memory_space<vmem>>, %arg7: memref<1x1x32xf32, #tpu.memory_space<vmem>>, %arg8: memref<1x32x64xf32, #tpu.memory_space<vmem>>, %arg9: memref<1x1x64xf32, #tpu.memory_space<vmem>>, %arg10: memref<1x64x32xf32, #tpu.memory_space<vmem>>, %arg11: memref<1x1x32xf32, #tpu.memory_space<vmem>>, %arg12: memref<1x1x32xf32, #tpu.memory_space<vmem>>, %arg13: memref<1x1x32xf32, #tpu.memory_space<vmem>>, %arg14: memref<1x1x32xf32, #tpu.memory_space<vmem>>, %arg15: memref<1x1x32xf32, #tpu.memory_space<vmem>>, %arg16: memref<16x32xf32, #tpu.memory_space<vmem>>, %arg17: memref<2x4x8x8xf32, #tpu.memory_space<vmem>>) attributes {dimension_semantics = [#tpu.dimension_semantics<arbitrary>], iteration_bounds = array<i64: 2>, scalar_prefetch = 0 : i64, scratch_operands = 0 : i64, tpu.core_type = #tpu.core_type<tc>, window_params = [{pipeline_mode = #tpu.pipeline_mode<synchronous>, transform_indices = @transform_0, window_bounds = array<i64: 16, 32>}, {pipeline_mode = #tpu.pipeline_mode<synchronous>, transform_indices = @transform_1, window_bounds = array<i64: 2, 8, 8>}, {pipeline_mode = #tpu.pipeline_mode<synchronous>, transform_indices = @transform_2, window_bounds = array<i64: 4, 8, 32>}, {transform_indices = @transform_3, window_bounds = array<i64: 1, 32, 96>}, {transform_indices = @transform_4, window_bounds = array<i64: 1, 1, 96>}, {transform_indices = @transform_5, window_bounds = array<i64: 1, 32, 32>}, {transform_indices = @transform_6, window_bounds = array<i64: 1, 1, 32>}, {transform_indices = @transform_7, window_bounds = array<i64: 1, 32, 64>}, {transform_indices = @transform_8, window_bounds = array<i64: 1, 1, 64>}, {transform_indices = @transform_9, window_bounds = array<i64: 1, 64, 32>}, {transform_indices = @transform_10, window_bounds = array<i64: 1, 1, 32>}, {transform_indices = @transform_11, window_bounds = array<i64: 1, 1, 32>}, {transform_indices = @transform_12, window_bounds = array<i64: 1, 1, 32>}, {transform_indices = @transform_13, window_bounds = array<i64: 1, 1, 32>}, {transform_indices = @transform_14, window_bounds = array<i64: 1, 1, 32>}, {pipeline_mode = #tpu.pipeline_mode<synchronous>, transform_indices = @transform_15, window_bounds = array<i64: 16, 32>}, {pipeline_mode = #tpu.pipeline_mode<synchronous>, transform_indices = @transform_16, window_bounds = array<i64: 2, 4, 8, 8>}]} {
    %c0_i32 = arith.constant 0 : i32
    %0 = arith.cmpi eq, %arg0, %c0_i32 : i32
    %1 = arith.extui %0 : i1 to i32
    %c0_i32_0 = arith.constant 0 : i32
    %2 = arith.cmpi ne, %1, %c0_i32_0 : i32
    scf.if %2 {
      %c0_66 = arith.constant 0 : index
      %c0_67 = arith.constant 0 : index
      %147 = vector.load %arg1[%c0_66, %c0_67] : memref<16x32xf32, #tpu.memory_space<vmem>>, vector<16x32xf32>
      %c0_68 = arith.constant 0 : index
      %c0_69 = arith.constant 0 : index
      %148 = vector.load %arg16[%c0_68, %c0_69] : memref<16x32xf32, #tpu.memory_space<vmem>>, vector<16x32xf32>
      tpu.vector_store %arg16[%c0_68, %c0_69], %147 {strides = array<i32>} : memref<16x32xf32, #tpu.memory_space<vmem>>, vector<16x32xf32>,
    } else {
    }
    %c0 = arith.constant 0 : index
    %c0_1 = arith.constant 0 : index
    %3 = vector.load %arg16[%c0, %c0_1] : memref<16x32xf32, #tpu.memory_space<vmem>>, vector<16x32xf32>
    %c0_2 = arith.constant 0 : index
    %c0_3 = arith.constant 0 : index
    %c0_4 = arith.constant 0 : index
    %4 = vector.load %arg4[%c0_2, %c0_3, %c0_4] : memref<1x32x96xf32, #tpu.memory_space<vmem>>, vector<1x32x96xf32>
    %5 = vector.shape_cast %4 : vector<1x32x96xf32> to vector<32x96xf32>
    %cst = arith.constant dense<0.000000e+00> : vector<16x96xf32>
    %6 = tpu.matmul %3, %5, %cst {dimension_numbers = #tpu.dot_dimension_numbers<[1], [0], [0], [1], [0, 0, 1, 1], [], []>} : vector<16x32xf32>, vector<32x96xf32>, vector<16x96xf32> -> vector<16x96xf32>
    %c0_5 = arith.constant 0 : index
    %c0_6 = arith.constant 0 : index
    %c0_7 = arith.constant 0 : index
    %7 = vector.load %arg5[%c0_5, %c0_6, %c0_7] : memref<1x1x96xf32, #tpu.memory_space<vmem>>, vector<1x1x96xf32>
    %8 = vector.shape_cast %7 : vector<1x1x96xf32> to vector<1x96xf32>
    %9 = vector.broadcast %8 : vector<1x96xf32> to vector<16x96xf32>
    %10 = arith.addf %6, %9 : vector<16x96xf32>
    %11 = vector.extract_strided_slice %10 {offsets = [0, 0], sizes = [16, 32], strides = [1, 1]} : vector<16x96xf32> to vector<16x32xf32>
    %cst_8 = arith.constant 0.353553385 : f32
    %12 = vector.broadcast %cst_8 : f32 to vector<16x32xf32>
    %13 = arith.mulf %11, %12 : vector<16x32xf32>
    %14 = vector.extract_strided_slice %10 {offsets = [0, 32], sizes = [16, 32], strides = [1, 1]} : vector<16x96xf32> to vector<16x32xf32>
    %15 = vector.extract_strided_slice %10 {offsets = [0, 64], sizes = [16, 32], strides = [1, 1]} : vector<16x96xf32> to vector<16x32xf32>
    %c0_9 = arith.constant 0 : index
    %c0_10 = arith.constant 0 : index
    %c0_11 = arith.constant 0 : index
    %16 = vector.load %arg3[%c0_9, %c0_10, %c0_11] : memref<4x8x32xf32, #tpu.memory_space<vmem>>, vector<4x8x32xf32>
    %17 = vector.shape_cast %13 : vector<16x32xf32> to vector<2x1x8x32xf32>
    %18 = vector.shape_cast %16 : vector<4x8x32xf32> to vector<1x4x8x32xf32>
    %19 = vector.broadcast %17 : vector<2x1x8x32xf32> to vector<2x4x8x32xf32>
    %20 = vector.broadcast %18 : vector<1x4x8x32xf32> to vector<2x4x8x32xf32>
    %21 = arith.mulf %19, %20 : vector<2x4x8x32xf32>
    %22 = vector.shape_cast %14 : vector<16x32xf32> to vector<2x1x8x32xf32>
    %23 = vector.shape_cast %16 : vector<4x8x32xf32> to vector<1x4x8x32xf32>
    %24 = vector.broadcast %22 : vector<2x1x8x32xf32> to vector<2x4x8x32xf32>
    %25 = vector.broadcast %23 : vector<1x4x8x32xf32> to vector<2x4x8x32xf32>
    %26 = arith.mulf %24, %25 : vector<2x4x8x32xf32>
    %27 = vector.shape_cast %15 : vector<16x32xf32> to vector<2x1x8x32xf32>
    %28 = vector.shape_cast %16 : vector<4x8x32xf32> to vector<1x4x8x32xf32>
    %29 = vector.broadcast %27 : vector<2x1x8x32xf32> to vector<2x4x8x32xf32>
    %30 = vector.broadcast %28 : vector<1x4x8x32xf32> to vector<2x4x8x32xf32>
    %31 = arith.mulf %29, %30 : vector<2x4x8x32xf32>
    %32 = vector.shape_cast %21 : vector<2x4x8x32xf32> to vector<8x8x32xf32>
    %33 = vector.shape_cast %26 : vector<2x4x8x32xf32> to vector<8x8x32xf32>
    %34 = vector.shape_cast %31 : vector<2x4x8x32xf32> to vector<8x8x32xf32>
    "tpu.trace_start"() <{level = 10 : i32, message = "nqd,nkd->nqk"}> : () -> ()
    %cst_12 = arith.constant dense<0.000000e+00> : vector<8x8x8xf32>
    %35 = tpu.matmul %32, %33, %cst_12 {dimension_numbers = #tpu.dot_dimension_numbers<[2], [2], [1], [1], [0, 0, 0, 1, 1, 1], [0], [0]>} : vector<8x8x32xf32>, vector<8x8x32xf32>, vector<8x8x8xf32> -> vector<8x8x8xf32>
    "tpu.trace_stop"() : () -> ()
    %36 = vector.shape_cast %35 : vector<8x8x8xf32> to vector<2x4x8x8xf32>
    %c0_13 = arith.constant 0 : index
    %c0_14 = arith.constant 0 : index
    %c0_15 = arith.constant 0 : index
    %37 = vector.load %arg2[%c0_13, %c0_14, %c0_15] : memref<2x8x8xf32, #tpu.memory_space<vmem>>, vector<2x8x8xf32>
    %38 = vector.shape_cast %37 : vector<2x8x8xf32> to vector<2x1x8x8xf32>
    %39 = vector.broadcast %38 : vector<2x1x8x8xf32> to vector<2x4x8x8xf32>
    %40 = arith.addf %36, %39 : vector<2x4x8x8xf32>
    %cst_16 = arith.constant dense<0xFF800000> : vector<2x4x8xf32>
    %41 = vector.multi_reduction <maximumf>, %40, %cst_16 [3] : vector<2x4x8x8xf32> to vector<2x4x8xf32>
    %42 = vector.shape_cast %41 : vector<2x4x8xf32> to vector<2x4x8x1xf32>
    %43 = vector.broadcast %42 : vector<2x4x8x1xf32> to vector<2x4x8x8xf32>
    %44 = arith.subf %40, %43 : vector<2x4x8x8xf32>
    %45 = math.exp %44 : vector<2x4x8x8xf32>
    %cst_17 = arith.constant dense<0.000000e+00> : vector<2x4x8xf32>
    %46 = vector.multi_reduction <add>, %45, %cst_17 [3] : vector<2x4x8x8xf32> to vector<2x4x8xf32>
    %47 = vector.shape_cast %46 : vector<2x4x8xf32> to vector<2x4x8x1xf32>
    %48 = tpu.reciprocal %47 {approx = true} : vector<2x4x8x1xf32> -> vector<2x4x8x1xf32>
    %49 = vector.broadcast %48 : vector<2x4x8x1xf32> to vector<2x4x8x8xf32>
    %50 = arith.mulf %45, %49 : vector<2x4x8x8xf32>
    %c1_i32 = arith.constant 1 : i32
    %51 = arith.cmpi eq, %arg0, %c1_i32 : i32
    %52 = arith.extui %51 : i1 to i32
    %c0_i32_18 = arith.constant 0 : i32
    %53 = arith.cmpi ne, %52, %c0_i32_18 : i32
    scf.if %53 {
      %c0_66 = arith.constant 0 : index
      %c0_67 = arith.constant 0 : index
      %c0_68 = arith.constant 0 : index
      %c0_69 = arith.constant 0 : index
      %147 = vector.load %arg17[%c0_66, %c0_67, %c0_68, %c0_69] : memref<2x4x8x8xf32, #tpu.memory_space<vmem>>, vector<2x4x8x8xf32>
      tpu.vector_store %arg17[%c0_66, %c0_67, %c0_68, %c0_69], %50 {strides = array<i32>} : memref<2x4x8x8xf32, #tpu.memory_space<vmem>>, vector<2x4x8x8xf32>,
    } else {
    }
    %54 = vector.shape_cast %50 : vector<2x4x8x8xf32> to vector<8x8x8xf32>
    "tpu.trace_start"() <{level = 10 : i32, message = "nqk,nkd->nqd"}> : () -> ()
    %cst_19 = arith.constant dense<0.000000e+00> : vector<8x8x32xf32>
    %55 = tpu.matmul %54, %34, %cst_19 {dimension_numbers = #tpu.dot_dimension_numbers<[2], [1], [1], [2], [0, 0, 0, 1, 1, 2], [0], [0]>} : vector<8x8x8xf32>, vector<8x8x32xf32>, vector<8x8x32xf32> -> vector<8x8x32xf32>
    "tpu.trace_stop"() : () -> ()
    %56 = vector.shape_cast %55 : vector<8x8x32xf32> to vector<2x4x8x32xf32>
    %57 = vector.extract_strided_slice %56 {offsets = [0, 0, 0, 0], sizes = [2, 1, 8, 32], strides = [1, 1, 1, 1]} : vector<2x4x8x32xf32> to vector<2x1x8x32xf32>
    %58 = vector.shape_cast %57 : vector<2x1x8x32xf32> to vector<2x8x32xf32>
    %59 = vector.extract_strided_slice %56 {offsets = [0, 1, 0, 0], sizes = [2, 1, 8, 32], strides = [1, 1, 1, 1]} : vector<2x4x8x32xf32> to vector<2x1x8x32xf32>
    %60 = vector.shape_cast %59 : vector<2x1x8x32xf32> to vector<2x8x32xf32>
    %61 = arith.addf %58, %60 : vector<2x8x32xf32>
    %62 = vector.extract_strided_slice %56 {offsets = [0, 2, 0, 0], sizes = [2, 1, 8, 32], strides = [1, 1, 1, 1]} : vector<2x4x8x32xf32> to vector<2x1x8x32xf32>
    %63 = vector.shape_cast %62 : vector<2x1x8x32xf32> to vector<2x8x32xf32>
    %64 = arith.addf %61, %63 : vector<2x8x32xf32>
    %65 = vector.extract_strided_slice %56 {offsets = [0, 3, 0, 0], sizes = [2, 1, 8, 32], strides = [1, 1, 1, 1]} : vector<2x4x8x32xf32> to vector<2x1x8x32xf32>
    %66 = vector.shape_cast %65 : vector<2x1x8x32xf32> to vector<2x8x32xf32>
    %67 = arith.addf %64, %66 : vector<2x8x32xf32>
    %68 = vector.shape_cast %67 : vector<2x8x32xf32> to vector<16x32xf32>
    %c0_20 = arith.constant 0 : index
    %c0_21 = arith.constant 0 : index
    %c0_22 = arith.constant 0 : index
    %69 = vector.load %arg6[%c0_20, %c0_21, %c0_22] : memref<1x32x32xf32, #tpu.memory_space<vmem>>, vector<1x32x32xf32>
    %70 = vector.shape_cast %69 : vector<1x32x32xf32> to vector<32x32xf32>
    %cst_23 = arith.constant dense<0.000000e+00> : vector<16x32xf32>
    %71 = tpu.matmul %68, %70, %cst_23 {dimension_numbers = #tpu.dot_dimension_numbers<[1], [0], [0], [1], [0, 0, 1, 1], [], []>} : vector<16x32xf32>, vector<32x32xf32>, vector<16x32xf32> -> vector<16x32xf32>
    %c0_24 = arith.constant 0 : index
    %c0_25 = arith.constant 0 : index
    %c0_26 = arith.constant 0 : index
    %72 = vector.load %arg7[%c0_24, %c0_25, %c0_26] : memref<1x1x32xf32, #tpu.memory_space<vmem>>, vector<1x1x32xf32>
    %73 = vector.shape_cast %72 : vector<1x1x32xf32> to vector<1x32xf32>
    %74 = vector.broadcast %73 : vector<1x32xf32> to vector<16x32xf32>
    %75 = arith.addf %71, %74 : vector<16x32xf32>
    %76 = arith.addf %3, %75 : vector<16x32xf32>
    %cst_27 = arith.constant dense<0.000000e+00> : vector<16xf32>
    %77 = vector.multi_reduction <add>, %76, %cst_27 [1] : vector<16x32xf32> to vector<16xf32>
    %78 = vector.shape_cast %77 : vector<16xf32> to vector<16x1xf32>
    %cst_28 = arith.constant 3.200000e+01 : f32
    %79 = vector.broadcast %cst_28 : f32 to vector<16x1xf32>
    %80 = arith.divf %78, %79 : vector<16x1xf32>
    %81 = vector.broadcast %80 : vector<16x1xf32> to vector<16x32xf32>
    %82 = arith.subf %76, %81 : vector<16x32xf32>
    %83 = arith.mulf %82, %82 : vector<16x32xf32>
    %cst_29 = arith.constant dense<0.000000e+00> : vector<16xf32>
    %84 = vector.multi_reduction <add>, %83, %cst_29 [1] : vector<16x32xf32> to vector<16xf32>
    %85 = vector.shape_cast %84 : vector<16xf32> to vector<16x1xf32>
    %cst_30 = arith.constant 3.200000e+01 : f32
    %86 = vector.broadcast %cst_30 : f32 to vector<16x1xf32>
    %87 = arith.divf %85, %86 : vector<16x1xf32>
    %88 = vector.broadcast %80 : vector<16x1xf32> to vector<16x32xf32>
    %89 = arith.subf %76, %88 : vector<16x32xf32>
    %cst_31 = arith.constant 9.99999996E-13 : f32
    %90 = vector.broadcast %cst_31 : f32 to vector<16x1xf32>
    %91 = arith.addf %87, %90 : vector<16x1xf32>
    %92 = math.rsqrt %91 : vector<16x1xf32>
    %93 = vector.broadcast %92 : vector<16x1xf32> to vector<16x32xf32>
    %94 = arith.mulf %89, %93 : vector<16x32xf32>
    %c0_32 = arith.constant 0 : index
    %c0_33 = arith.constant 0 : index
    %c0_34 = arith.constant 0 : index
    %95 = vector.load %arg12[%c0_32, %c0_33, %c0_34] : memref<1x1x32xf32, #tpu.memory_space<vmem>>, vector<1x1x32xf32>
    %96 = vector.shape_cast %95 : vector<1x1x32xf32> to vector<1x32xf32>
    %97 = vector.broadcast %96 : vector<1x32xf32> to vector<16x32xf32>
    %98 = arith.mulf %94, %97 : vector<16x32xf32>
    %c0_35 = arith.constant 0 : index
    %c0_36 = arith.constant 0 : index
    %c0_37 = arith.constant 0 : index
    %99 = vector.load %arg13[%c0_35, %c0_36, %c0_37] : memref<1x1x32xf32, #tpu.memory_space<vmem>>, vector<1x1x32xf32>
    %100 = vector.shape_cast %99 : vector<1x1x32xf32> to vector<1x32xf32>
    %101 = vector.broadcast %100 : vector<1x32xf32> to vector<16x32xf32>
    %102 = arith.addf %98, %101 : vector<16x32xf32>
    %c0_38 = arith.constant 0 : index
    %c0_39 = arith.constant 0 : index
    %c0_40 = arith.constant 0 : index
    %103 = vector.load %arg8[%c0_38, %c0_39, %c0_40] : memref<1x32x64xf32, #tpu.memory_space<vmem>>, vector<1x32x64xf32>
    %104 = vector.shape_cast %103 : vector<1x32x64xf32> to vector<32x64xf32>
    %cst_41 = arith.constant dense<0.000000e+00> : vector<16x64xf32>
    %105 = tpu.matmul %102, %104, %cst_41 {dimension_numbers = #tpu.dot_dimension_numbers<[1], [0], [0], [1], [0, 0, 1, 1], [], []>} : vector<16x32xf32>, vector<32x64xf32>, vector<16x64xf32> -> vector<16x64xf32>
    %c0_42 = arith.constant 0 : index
    %c0_43 = arith.constant 0 : index
    %c0_44 = arith.constant 0 : index
    %106 = vector.load %arg9[%c0_42, %c0_43, %c0_44] : memref<1x1x64xf32, #tpu.memory_space<vmem>>, vector<1x1x64xf32>
    %107 = vector.shape_cast %106 : vector<1x1x64xf32> to vector<1x64xf32>
    %108 = vector.broadcast %107 : vector<1x64xf32> to vector<16x64xf32>
    %109 = arith.addf %105, %108 : vector<16x64xf32>
    %cst_45 = arith.constant 0.000000e+00 : f32
    %110 = vector.broadcast %cst_45 : f32 to vector<16x64xf32>
    %111 = arith.maximumf %109, %110 : vector<16x64xf32>
    %c0_46 = arith.constant 0 : index
    %c0_47 = arith.constant 0 : index
    %c0_48 = arith.constant 0 : index
    %112 = vector.load %arg10[%c0_46, %c0_47, %c0_48] : memref<1x64x32xf32, #tpu.memory_space<vmem>>, vector<1x64x32xf32>
    %113 = vector.shape_cast %112 : vector<1x64x32xf32> to vector<64x32xf32>
    %cst_49 = arith.constant dense<0.000000e+00> : vector<16x32xf32>
    %114 = tpu.matmul %111, %113, %cst_49 {dimension_numbers = #tpu.dot_dimension_numbers<[1], [0], [0], [1], [0, 0, 1, 1], [], []>} : vector<16x64xf32>, vector<64x32xf32>, vector<16x32xf32> -> vector<16x32xf32>
    %c0_50 = arith.constant 0 : index
    %c0_51 = arith.constant 0 : index
    %c0_52 = arith.constant 0 : index
    %115 = vector.load %arg11[%c0_50, %c0_51, %c0_52] : memref<1x1x32xf32, #tpu.memory_space<vmem>>, vector<1x1x32xf32>
    %116 = vector.shape_cast %115 : vector<1x1x32xf32> to vector<1x32xf32>
    %117 = vector.broadcast %116 : vector<1x32xf32> to vector<16x32xf32>
    %118 = arith.addf %114, %117 : vector<16x32xf32>
    %119 = arith.addf %102, %118 : vector<16x32xf32>
    %cst_53 = arith.constant dense<0.000000e+00> : vector<16xf32>
    %120 = vector.multi_reduction <add>, %119, %cst_53 [1] : vector<16x32xf32> to vector<16xf32>
    %121 = vector.shape_cast %120 : vector<16xf32> to vector<16x1xf32>
    %cst_54 = arith.constant 3.200000e+01 : f32
    %122 = vector.broadcast %cst_54 : f32 to vector<16x1xf32>
    %123 = arith.divf %121, %122 : vector<16x1xf32>
    %124 = vector.broadcast %123 : vector<16x1xf32> to vector<16x32xf32>
    %125 = arith.subf %119, %124 : vector<16x32xf32>
    %126 = arith.mulf %125, %125 : vector<16x32xf32>
    %cst_55 = arith.constant dense<0.000000e+00> : vector<16xf32>
    %127 = vector.multi_reduction <add>, %126, %cst_55 [1] : vector<16x32xf32> to vector<16xf32>
    %128 = vector.shape_cast %127 : vector<16xf32> to vector<16x1xf32>
    %cst_56 = arith.constant 3.200000e+01 : f32
    %129 = vector.broadcast %cst_56 : f32 to vector<16x1xf32>
    %130 = arith.divf %128, %129 : vector<16x1xf32>
    %131 = vector.broadcast %123 : vector<16x1xf32> to vector<16x32xf32>
    %132 = arith.subf %119, %131 : vector<16x32xf32>
    %cst_57 = arith.constant 9.99999996E-13 : f32
    %133 = vector.broadcast %cst_57 : f32 to vector<16x1xf32>
    %134 = arith.addf %130, %133 : vector<16x1xf32>
    %135 = math.rsqrt %134 : vector<16x1xf32>
    %136 = vector.broadcast %135 : vector<16x1xf32> to vector<16x32xf32>
    %137 = arith.mulf %132, %136 : vector<16x32xf32>
    %c0_58 = arith.constant 0 : index
    %c0_59 = arith.constant 0 : index
    %c0_60 = arith.constant 0 : index
    %138 = vector.load %arg14[%c0_58, %c0_59, %c0_60] : memref<1x1x32xf32, #tpu.memory_space<vmem>>, vector<1x1x32xf32>
    %139 = vector.shape_cast %138 : vector<1x1x32xf32> to vector<1x32xf32>
    %140 = vector.broadcast %139 : vector<1x32xf32> to vector<16x32xf32>
    %141 = arith.mulf %137, %140 : vector<16x32xf32>
    %c0_61 = arith.constant 0 : index
    %c0_62 = arith.constant 0 : index
    %c0_63 = arith.constant 0 : index
    %142 = vector.load %arg15[%c0_61, %c0_62, %c0_63] : memref<1x1x32xf32, #tpu.memory_space<vmem>>, vector<1x1x32xf32>
    %143 = vector.shape_cast %142 : vector<1x1x32xf32> to vector<1x32xf32>
    %144 = vector.broadcast %143 : vector<1x32xf32> to vector<16x32xf32>
    %145 = arith.addf %141, %144 : vector<16x32xf32>
    %c0_64 = arith.constant 0 : index
    %c0_65 = arith.constant 0 : index
    %146 = vector.load %arg16[%c0_64, %c0_65] : memref<16x32xf32, #tpu.memory_space<vmem>>, vector<16x32xf32>
    tpu.vector_store %arg16[%c0_64, %c0_65], %145 {strides = array<i32>} : memref<16x32xf32, #tpu.memory_space<vmem>>, vector<16x32xf32>,
    return
  }
  func.func @transform_0(%arg0: i32) -> (i32, i32) {
    %c0_i32 = arith.constant 0 : i32
    %c0_i32_0 = arith.constant 0 : i32
    %c0_i32_1 = arith.constant 0 : i32
    return %c0_i32, %c0_i32_0 : i32, i32
  }
  func.func @transform_1(%arg0: i32) -> (i32, i32, i32) {
    %c0_i32 = arith.constant 0 : i32
    %c0_i32_0 = arith.constant 0 : i32
    %c0_i32_1 = arith.constant 0 : i32
    %c0_i32_2 = arith.constant 0 : i32
    return %c0_i32, %c0_i32_0, %c0_i32_1 : i32, i32, i32
  }
  func.func @transform_2(%arg0: i32) -> (i32, i32, i32) {
    %c0_i32 = arith.constant 0 : i32
    %c0_i32_0 = arith.constant 0 : i32
    %c0_i32_1 = arith.constant 0 : i32
    %c0_i32_2 = arith.constant 0 : i32
    return %c0_i32, %c0_i32_0, %c0_i32_1 : i32, i32, i32
  }
  func.func @transform_3(%arg0: i32) -> (i32, i32, i32) {
    %c0_i32 = arith.constant 0 : i32
    %c0_i32_0 = arith.constant 0 : i32
    %c0_i32_1 = arith.constant 0 : i32
    return %arg0, %c0_i32, %c0_i32_0 : i32, i32, i32
  }
  func.func @transform_4(%arg0: i32) -> (i32, i32, i32) {
    %c0_i32 = arith.constant 0 : i32
    %c0_i32_0 = arith.constant 0 : i32
    %c0_i32_1 = arith.constant 0 : i32
    return %arg0, %c0_i32, %c0_i32_0 : i32, i32, i32
  }
  func.func @transform_5(%arg0: i32) -> (i32, i32, i32) {
    %c0_i32 = arith.constant 0 : i32
    %c0_i32_0 = arith.constant 0 : i32
    %c0_i32_1 = arith.constant 0 : i32
    return %arg0, %c0_i32, %c0_i32_0 : i32, i32, i32
  }
  func.func @transform_6(%arg0: i32) -> (i32, i32, i32) {
    %c0_i32 = arith.constant 0 : i32
    %c0_i32_0 = arith.constant 0 : i32
    %c0_i32_1 = arith.constant 0 : i32
    return %arg0, %c0_i32, %c0_i32_0 : i32, i32, i32
  }
  func.func @transform_7(%arg0: i32) -> (i32, i32, i32) {
    %c0_i32 = arith.constant 0 : i32
    %c0_i32_0 = arith.constant 0 : i32
    %c0_i32_1 = arith.constant 0 : i32
    return %arg0, %c0_i32, %c0_i32_0 : i32, i32, i32
  }
  func.func @transform_8(%arg0: i32) -> (i32, i32, i32) {
    %c0_i32 = arith.constant 0 : i32
    %c0_i32_0 = arith.constant 0 : i32
    %c0_i32_1 = arith.constant 0 : i32
    return %arg0, %c0_i32, %c0_i32_0 : i32, i32, i32
  }
  func.func @transform_9(%arg0: i32) -> (i32, i32, i32) {
    %c0_i32 = arith.constant 0 : i32
    %c0_i32_0 = arith.constant 0 : i32
    %c0_i32_1 = arith.constant 0 : i32
    return %arg0, %c0_i32, %c0_i32_0 : i32, i32, i32
  }
  func.func @transform_10(%arg0: i32) -> (i32, i32, i32) {
    %c0_i32 = arith.constant 0 : i32
    %c0_i32_0 = arith.constant 0 : i32
    %c0_i32_1 = arith.constant 0 : i32
    return %arg0, %c0_i32, %c0_i32_0 : i32, i32, i32
  }
  func.func @transform_11(%arg0: i32) -> (i32, i32, i32) {
    %c0_i32 = arith.constant 0 : i32
    %c0_i32_0 = arith.constant 0 : i32
    %c0_i32_1 = arith.constant 0 : i32
    return %arg0, %c0_i32, %c0_i32_0 : i32, i32, i32
  }
  func.func @transform_12(%arg0: i32) -> (i32, i32, i32) {
    %c0_i32 = arith.constant 0 : i32
    %c0_i32_0 = arith.constant 0 : i32
    %c0_i32_1 = arith.constant 0 : i32
    return %arg0, %c0_i32, %c0_i32_0 : i32, i32, i32
  }
  func.func @transform_13(%arg0: i32) -> (i32, i32, i32) {
    %c0_i32 = arith.constant 0 : i32
    %c0_i32_0 = arith.constant 0 : i32
    %c0_i32_1 = arith.constant 0 : i32
    return %arg0, %c0_i32, %c0_i32_0 : i32, i32, i32
  }
  func.func @transform_14(%arg0: i32) -> (i32, i32, i32) {
    %c0_i32 = arith.constant 0 : i32
    %c0_i32_0 = arith.constant 0 : i32
    %c0_i32_1 = arith.constant 0 : i32
    return %arg0, %c0_i32, %c0_i32_0 : i32, i32, i32
  }
  func.func @transform_15(%arg0: i32) -> (i32, i32) {
    %c0_i32 = arith.constant 0 : i32
    %c0_i32_0 = arith.constant 0 : i32
    %c0_i32_1 = arith.constant 0 : i32
    return %c0_i32, %c0_i32_0 : i32, i32
  }
  func.func @transform_16(%arg0: i32) -> (i32, i32, i32, i32) {
    %c0_i32 = arith.constant 0 : i32
    %c0_i32_0 = arith.constant 0 : i32
    %c0_i32_1 = arith.constant 0 : i32
    %c0_i32_2 = arith.constant 0 : i32
    %c0_i32_3 = arith.constant 0 : i32
    return %c0_i32, %c0_i32_0, %c0_i32_1, %c0_i32_2 : i32, i32, i32, i32
  }
}

</mosaic_0001>

<bundles_post_ra>
// kernel: tpu_custom_call.1
= control target key start
LH: loop header
LB: loop body
LE: loop exit
PB: predicated region body
PF: predicated region fallthrough
CT: control target
= control target key end

     0   :  { %s3848_s0 = inlined_call_operand.hbm [shape: f32[16,32], index: 0, kind: input, shape index: {}]   ;;  %s3849_s1 = inlined_call_operand.hbm [shape: f32[2,8,8], index: 1, kind: input, shape index: {}]   ;;  %s3850_s2 = inlined_call_operand.hbm [shape: f32[4,8,32], index: 2, kind: input, shape index: {}]   ;;  %s3851_s3 = inlined_call_operand.vmem [shape: f32[2,32,96], index: 3, kind: input, shape index: {}]   ;;  %s3852_s4 = inlined_call_operand.vmem [shape: f32[2,1,96], index: 4, kind: input, shape index: {}]   ;;  %s3853_s5 = inlined_call_operand.vmem [shape: f32[2,32,32], index: 5, kind: input, shape index: {}]   ;;  %s3854_s6 = inlined_call_operand.vmem [shape: f32[2,1,32], index: 6, kind: input, shape index: {}]   ;;  %s3855_s7 = inlined_call_operand.vmem [shape: f32[2,32,64], index: 7, kind: input, shape index: {}]   ;;  %s3856_s8 = inlined_call_operand.vmem [shape: f32[2,1,64], index: 8, kind: input, shape index: {}]   ;;  %s3857_s9 = inlined_call_operand.vmem [shape: f32[2,64,32], index: 9, kind: input, shape index: {}]   ;;  %s3858_s10 = inlined_call_operand.vmem [shape: f32[2,1,32], index: 10, kind: input, shape index: {}]   ;;  %s3859_s11 = inlined_call_operand.vmem [shape: f32[2,1,32], index: 11, kind: input, shape index: {}]   ;;  %s3860_s12 = inlined_call_operand.vmem [shape: f32[2,1,32], index: 12, kind: input, shape index: {}]   ;;  %s3861_s13 = inlined_call_operand.vmem [shape: f32[2,1,32], index: 13, kind: input, shape index: {}]   ;;  %s3862_s14 = inlined_call_operand.vmem [shape: f32[2,1,32], index: 14, kind: input, shape index: {}]   ;;  %s3863_s15 = inlined_call_operand.hbm [shape: f32[16,32], index: 15, kind: output, shape index: {0}]   ;;  %s3864_s16 = inlined_call_operand.hbm [shape: f32[2,4,8,8], index: 16, kind: output, shape index: {1}]  }
   0x1   :  { %3866 = sst [smem:[#allocation16_spill]] %s3848_s0 }
   0x2   :  { %3867 = sst [smem:[#allocation17_spill]] %s3849_s1 }
   0x3   :  { %3868 = sst [smem:[#allocation18_spill]] %s3850_s2 }
   0x4   :  { %3869 = sst [smem:[#allocation19_spill]] %s3851_s3 }
   0x5   :  { %3870 = sst [smem:[#allocation20_spill]] %s3853_s5 }
   0x6   :  { %3871 = sst [smem:[#allocation21_spill]] %s3855_s7 }
   0x7   :  { %3872 = sst [smem:[#allocation22_spill]] %s3863_s15 }
   0x8   :  { %3873 = sst [smem:[#allocation23_spill]] %s3864_s16 }
   0x9   :  { %22 = vsyncpa [#allocation3], 0 }
   0xa   :  { %23 = vsyncpa [#allocation6], 0 }
   0xb   :  { %24 = vsyncpa [#allocation4], 0 }
   0xc   :  { %25 = vsyncpa [#allocation10], 0  ;;  %s3444_s21 = smov 0  }
   0xd LB: > { %3874 = sst [smem:[#allocation15_spill]] %s3343_s21  ;;  %s3450_s22 = sadd.s32 4294967295, %s3343_s21   ;;  %s3343_s21 = sphi %s3444_s21, %s31_s21  }
   0xe   : > { %p2832_p0 = scmp.ge.s32.totalorder %s3343_s21, 1  ;;  %p453_p1 = scmp.lt.s32.totalorder %s3343_s21, 3 }
   0xf   : > { %p3123_p3 = scmp.eq.s32.totalorder %s3450_s22, 0  ;;  %s3345_s24 = smov [#allocation5]  }
  0x10   : > { %p3456_p4 = pnand %p2832_p0, %p453_p1  ;;  %s478_s25 = sshll.u32 %s3345_s24, 4  ;;  %s479_s25 = int_to_ptr.vmem [resolvable:$true] %s478_s25 }
  0x11   : > { %s3346_s26 = smov [#allocation2]   ;;  %s3347_s29 = smov [#allocation7]  }
  0x12   : > { %p3113_p5 = pneg %p3456_p4  ;;  %s465_s27 = sshll.u32 %s3346_s26, 4  ;;  %s466_s27 = int_to_ptr.vmem [resolvable:$true] %s465_s27 }
  0x13   : > { %s491_s30 = sshll.u32 %s3347_s29, 4  ;;  %s3206_s0 = scalar_lea.vmem %s479_s25, 256  ;;  %s3468_s30 = int_to_ptr.vmem [resolvable:$true] %s491_s30 }
  0x14   : > { %p3464_p6 = pnand %p3123_p3, %p3113_p5  ;;  %p3207_p8 = scmp.ne.s32.totalorder %s479_s25, %s3206_s0 }
  0x15   : > { %p3214_p11 = scmp.lt.s32.totalorder %s479_s25, %s479_s25  ;;  %p3215_p12 = scmp.lt.s32.totalorder %s3206_s0, %s3206_s0 }
  0x16   : > { %p3197_p7 = pneg %p3464_p6 }
  0x17   : > { %p3216_p13 = por %p3215_p12, %p3214_p11 }
  0x18   : > { %p3209_p9 = pnand %p3207_p8, %p3197_p7 }
  0x1a   : > { %p3210_p10 = pneg %p3209_p9 }
  0x1c   : > { %p3217_p0 = pnand %p3216_p13, %p3210_p10 }
  0x1e   : > { %3220 = shalt.err (!%p3217_p0)
}
  0x1f   : > { %s3348_s17 = smov 128   ;;  %s3349_s18 = smov 8  }
  0x20   : > { %s3877_s1 = sld [smem:[#allocation17_spill]]  ;;  %s3232_s24 = scalar_lea.vmem %s466_s27, 256 }
  0x21   : > { %p3233_p1 = scmp.ne.s32.totalorder %s466_s27, %s3232_s24  ;;  %p3240_p9 = scmp.lt.s32.totalorder %s466_s27, %s466_s27 }
  0x22   : > { %p3241_p2 = scmp.lt.s32.totalorder %s3232_s24, %s3232_s24 }
  0x23   : > { %p3235_p5 = pnand %p3233_p1, %p3197_p7 }
  0x24   : > { %p3242_p11 = por %p3241_p2, %p3240_p9 }
  0x25   : > { %p3236_p8 = pneg %p3235_p5 }
  0x26   : > { %3119 = dma.hbm_to_vmem [thread:$0]  (!%p3464_p6), %s3877_s1, 256, %s479_s25, [#allocation6], %s3348_s17, %s3348_s17, %s3349_s18  }
  0x27   : > { %p3243_p10 = pnand %p3242_p11, %p3236_p8 }
  0x29   : > { %3246 = shalt.err (!%p3243_p10)
}
  0x2a   : > { %s3878_s0 = sld [smem:[#allocation16_spill]]  ;;  %s3258_s25 = scalar_lea.vmem %s3468_s30, 512 }
  0x2b   : > { %p3259_p12 = scmp.ne.s32.totalorder %s3468_s30, %s3258_s25  ;;  %p3266_p2 = scmp.lt.s32.totalorder %s3468_s30, %s3468_s30 }
  0x2c   : > { %p3267_p1 = scmp.lt.s32.totalorder %s3258_s25, %s3258_s25 }
  0x2d   : > { %p3261_p13 = pnand %p3259_p12, %p3197_p7 }
  0x2e   : > { %p3268_p5 = por %p3267_p1, %p3266_p2 }
  0x2f   : > { %p3262_p0 = pneg %p3261_p13 }
  0x30   : > { %3116 = dma.hbm_to_vmem [thread:$0]  (!%p3464_p6), %s3878_s0, 256, %s466_s27, [#allocation3], %s3348_s17, %s3348_s17, %s3349_s18  }
  0x31   : > { %p3269_p8 = pnand %p3268_p5, %p3262_p0 }
  0x33   : > { %3272 = shalt.err (!%p3269_p8)
}
  0x34   : > { %s3879_s2 = sld [smem:[#allocation18_spill]] }
  0x36   : > { %587 = sbr.rel (%p3456_p4) target bundleno = 2488 (0x9b8), region = 80 }
  0x3a   : > { %3122 = dma.hbm_to_vmem [thread:$0]  (!%p3464_p6), %s3879_s2, 512, %s3468_s30, [#allocation6], %s3348_s17, %s3348_s17, %s3349_s18  }
  0x3b   : > { %3326 = dma.done.wait (%p3123_p3), [#allocation3], 256  }
  0x3c   : > { %3328 = vsyncadd (%p3123_p3), [#allocation3], 4294967040 }
  0x3d   : > { %3330 = dma.done.wait (%p3123_p3), [#allocation6], 768  }
  0x3e   : > { %3332 = vsyncadd (%p3123_p3), [#allocation6], 4294966528  ;;  %p679_p7 = scmp.lt.s32.totalorder %s3450_s22, 1  ;;  %s3880_s3 = sld [smem:[#allocation19_spill]] }
  0x3f   : > { %s3881_s5 = sld [smem:[#allocation20_spill]]  ;;  %p3883_p3 = scmp.ne.s32.totalorder %s3450_s22, 0 }
  0x40   : > { %s3513_s27 = scalar_select %p679_p7, %s3450_s22, 1 }
  0x41   : > { %s3882_s7 = sld [smem:[#allocation21_spill]] }
  0x42   : > { %s2897_s23 = sshll.u32 %s3513_s27, 5  ;;  %s2900_s24 = sshll.u32 %s3513_s27, 6 }
  0x43   : > { %s3547_s29 = scalar_lea.vmem %s3857_s9, %s2900_s24  ;;  %s710_s19 = scalar_lea.vmem %s3858_s10, %s3513_s27 }
  0x44   : > { %s3523_s26 = scalar_lea.vmem %s3880_s3, %s2897_s23  ;;  %s713_s2 = scalar_lea.vmem %s3859_s11, %s3513_s27 }
  0x45   : > { %s3528_s25 = scalar_lea.vmem %s3881_s5, %s2897_s23  ;;  %s719_s18 = scalar_lea.vmem %s3861_s13, %s3513_s27 }
  0x46   : > { %s722_s17 = scalar_lea.vmem %s3862_s14, %s3513_s27  ;;  %726 = sbr.rel (%p3883_p3) target bundleno = 77 (0x4d), region = 96 }
  0x47   : > { %s3537_s15 = scalar_lea.vmem %s3882_s7, %s2897_s23  ;;  %s716_s7 = scalar_lea.vmem %s3860_s12, %s3513_s27 }
  0x4b   : > { %v727_v0 = vld [vmem:[#allocation2] sm:$0xff]  ;;  %vm729_vm0 = vcmask 261120   ;;  %v728_v1 = vld [vmem:[#allocation2 + $0x8] sm:$0xff] }
  0x4c   : > { %730 = vst.msk [vmem:[#allocation8] sm:$0xff] %vm729_vm0, %v727_v0  ;;  %731 = vst.msk [vmem:[#allocation8 + $0x8] sm:$0xff] %vm729_vm0, %v728_v1 }
  0x4d PF: > { %v737_v2 = vld [vmem:[%s3523_s26 + $0x18] sm:$0xff]  ;;  %v736_v3 = vld [vmem:[%s3523_s26 + $0x10] sm:$0xff]  ;;  %vm745_vm1 = vcmask 261120   ;;  %v735_v5 = vld [vmem:[%s3523_s26 + $0x8] sm:$0xff]  ;;  %s3350_s1 = smov 32   ;;  %v3351_v12 = vmov 0.0  }
  0x4e   : > { %2961 = vmatprep.subr.mxu1 %v737_v2  ;;  %v3578_v6 = vld [vmem:[#allocation7 + $0x10] sm:$0xff]  ;;  %v3580_v7 = vld [vmem:[#allocation7] sm:$0xff]  ;;  %v3585_v9 = vld [vmem:[#allocation7 + $0x18] sm:$0xff]  ;;  %2982 = vmatprep.subr.mxu0 %v3351_v12  ;;  %vm3352_vm2 = vmmov 0   ;;  %s3353_s24 = smov 96   ;;  %vm1519_vm3 = vcmask 64512  }
  0x4f   : > { %2962 = vmatpush3.msra.mxu1 %v737_v2  ;;  %849 = vrot.lane.b32.xlu1 %v3578_v6, %s3350_s1  ;;  %v734_v8 = vld [vmem:[%s3523_s26] sm:$0xff]  ;;  %v3587_v10 = vld [vmem:[#allocation7 + $0x8] sm:$0xff]  ;;  %s3884_s26 = scalar_lea.vmem %s3852_s4, %s3513_s27  ;;  %v1509_v48 = vld [vmem:[#allocation5] sm:$0xff]  ;;  %s3354_s0 = smov 64  }
  0x50   : > { %2963 = vmatprep.subr.mxu1 %v736_v3  ;;  %845 = vrot.lane.b32.xlu0 %v3580_v7, %s3350_s1  ;;  %v2850_v16 = vld [vmem:[%s3884_s26] ss:$0 sm:$0xff]  ;;  %v1510_v59 = vld [vmem:[#allocation5 + $0x8] sm:$0xff]  ;;  %p2869_p4 = scmp.ne.s32.totalorder %s3450_s22, 1 }
  0x51   : > { %2964 = vmatpush3.msra.mxu1 %v736_v3  ;;  %2984 = vmatprep.mubr.msk.f32.mxu0 %vm3352_vm2, %v3351_v12 }
  0x52   : > { %2965 = vmatprep.subr.mxu1 %v735_v5 }
  0x53   : > { %v3573_v4 = vld [vmem:[#allocation8] sm:$0xff]  ;;  %2966 = vmatpush3.msra.mxu1 %v735_v5  ;;  %v3589_v11 = vld [vmem:[#allocation8 + $0x8] sm:$0xff]  ;;  %851 = vrot.lane.b32.xlu1 %v3585_v9, %s3350_s1 }
  0x54   : > { %2969 = vmatprep.mubr.msk.f32.mxu1 %vm745_vm1, %v3573_v4  ;;  %2967 = vmatprep.subr.mxu1 %v734_v8 }
  0x55   : > { %2968 = vmatpush3.msra.mxu1 %v734_v8  ;;  %847 = vrot.lane.b32.xlu0 %v3587_v10, %s3350_s1 }
  0x56   : > { %2970 = vmatmul.mubr.msk.f32.vlgmr.msra.gmra.mxu1 %vm745_vm1, %v3589_v11  ;;  %2972 = vmatprep.subr.mxu1 %v3351_v12 }
  0x57   : > { %2974 = vmatprep.mubr.msk.f32.mxu1 %vm3352_vm2, %v3351_v12 }
  0xc1   : > { %v850_v15 = vpop.permute.xlu1 %849 }
  0xc2   : > { %v846_v13 = vpop.permute.xlu0 %845 }
  0xc5   : > { %v852_v22 = vpop.permute.xlu1 %851 }
  0xc7   : > { %v848_v19 = vpop.permute.xlu0 %847 }
 0x116   : > { %v2971_v14 = vpop.f32.mrf.mxu1 }
 0x117   : > { %v3610_v23 = vadd.f32 %v2971_v14, %v2850_v16 }
 0x118   : > { %v818_v17 = vpop.f32.mrf.mxu1 }
 0x119   : > { %v3606_v18 = vadd.f32 %v2850_v16, %v818_v17  ;;  %v862_v26 = vmul.f32 %v848_v19, %v3610_v23  ;;  %v861_v27 = vmul.f32 %v846_v13, %v3610_v23  ;;  %v864_v28 = vmul.f32 %v852_v22, %v3610_v23 }
 0x11a   : > { %v863_v29 = vmul.f32 %v850_v15, %v3610_v23  ;;  %v828_v38 = vmul.f32 0.35355338, %v3610_v23 }
 0x11b   : > { %v858_v20 = vmul.f32 %v848_v19, %v3606_v18  ;;  %v857_v21 = vmul.f32 %v846_v13, %v3606_v18  ;;  %v860_v24 = vmul.f32 %v852_v22, %v3606_v18  ;;  %v859_v25 = vmul.f32 %v850_v15, %v3606_v18 }
 0x11c   : > { %v827_v30 = vmul.f32 0.35355338, %v3606_v18  ;;  %v837_v42 = vmul.f32 %v3580_v7, %v828_v38  ;;  %v838_v44 = vmul.f32 %v3587_v10, %v828_v38  ;;  %v839_v45 = vmul.f32 %v3578_v6, %v828_v38 }
 0x11d   : > { %964 = vrot.lane.b32.xlu1 %v858_v20, %s3353_s24  ;;  %886 = vrot.lane.b32.xlu0 %v857_v21, %s3353_s24  ;;  %v840_v47 = vmul.f32 %v3585_v9, %v828_v38 }
 0x11e   : > { %v833_v33 = vmul.f32 %v3580_v7, %v827_v30  ;;  %v834_v36 = vmul.f32 %v3587_v10, %v827_v30  ;;  %v835_v37 = vmul.f32 %v3578_v6, %v827_v30  ;;  %v836_v41 = vmul.f32 %v3585_v9, %v827_v30 }
 0x121   : > { %1120 = vrot.lane.b32.xlu1 %v860_v24, %s3353_s24  ;;  %1042 = vrot.lane.b32.xlu0 %v859_v25, %s3353_s24 }
 0x125   : > { %1276 = vrot.lane.b32.xlu1 %v862_v26, %s3353_s24  ;;  %1198 = vrot.lane.b32.xlu0 %v861_v27, %s3353_s24 }
 0x129   : > { %1432 = vrot.lane.b32.xlu1 %v864_v28, %s3353_s24  ;;  %1354 = vrot.lane.b32.xlu0 %v863_v29, %s3353_s24 }
 0x18f   : > { %v965_v31 = vpop.permute.xlu1 %964  ;;  %v887_v32 = vpop.permute.xlu0 %886 }
 0x190   : > { %2973 = vmatpush3.xpose.msk.msra.mxu1 %vm745_vm1, %v887_v32 }
 0x191   : > { %2977 = vmatprep.subr.mxu1 %v3351_v12 }
 0x193   : > { %v1121_v34 = vpop.permute.xlu1 %1120  ;;  %v1043_v35 = vpop.permute.xlu0 %1042  ;;  %2975 = vmatmul.mubr.msk.f32.vlgmr.msra.gmra.mxu1 %vm745_vm1, %v833_v33 }
 0x194   : > { %2978 = vmatpush3.xpose.msk.msra.mxu1 %vm745_vm1, %v965_v31  ;;  %2983 = vmatpush3.xpose.msk.msra.mxu0 %vm745_vm1, %v1043_v35 }
 0x195   : > { %2979 = vmatprep.mubr.msk.f32.mxu1 %vm3352_vm2, %v3351_v12  ;;  %2992 = vmatprep.subr.mxu0 %v3351_v12 }
 0x196   : > { %2987 = vmatprep.subr.mxu1 %v3351_v12 }
 0x197   : > { %v1199_v39 = vpop.permute.xlu0 %1198  ;;  %2980 = vmatmul.mubr.msk.f32.vlgmr.msra.gmra.mxu1 %vm745_vm1, %v834_v36  ;;  %2985 = vmatmul.mubr.msk.f32.vlgmr.msra.gmra.mxu0 %vm745_vm1, %v835_v37  ;;  %v1277_v40 = vpop.permute.xlu1 %1276 }
 0x198   : > { %2988 = vmatpush3.xpose.msk.msra.mxu1 %vm745_vm1, %v1121_v34  ;;  %2993 = vmatpush3.xpose.msk.msra.mxu0 %vm745_vm1, %v1199_v39 }
 0x199   : > { %2989 = vmatprep.mubr.msk.f32.mxu1 %vm3352_vm2, %v3351_v12  ;;  %2994 = vmatprep.mubr.msk.f32.mxu0 %vm3352_vm2, %v3351_v12 }
 0x19a   : > { %2997 = vmatprep.subr.mxu1 %v3351_v12  ;;  %3002 = vmatprep.subr.mxu0 %v3351_v12 }
 0x19b   : > { %v1355_v43 = vpop.permute.xlu0 %1354  ;;  %2990 = vmatmul.mubr.msk.f32.vlgmr.msra.gmra.mxu1 %vm745_vm1, %v836_v41  ;;  %2995 = vmatmul.mubr.msk.f32.vlgmr.msra.gmra.mxu0 %vm745_vm1, %v837_v42  ;;  %v1433_v46 = vpop.permute.xlu1 %1432 }
 0x19c   : > { %2998 = vmatpush3.xpose.msk.msra.mxu1 %vm745_vm1, %v1277_v40  ;;  %3003 = vmatpush3.xpose.msk.msra.mxu0 %vm745_vm1, %v1355_v43 }
 0x19d   : > { %2999 = vmatprep.mubr.msk.f32.mxu1 %vm3352_vm2, %v3351_v12  ;;  %3004 = vmatprep.mubr.msk.f32.mxu0 %vm3352_vm2, %v3351_v12 }
 0x19e   : > { %3007 = vmatprep.subr.mxu1 %v3351_v12 }
 0x19f   : > { %3000 = vmatmul.mubr.msk.f32.vlgmr.msra.gmra.mxu1 %vm745_vm1, %v838_v44  ;;  %3005 = vmatmul.mubr.msk.f32.vlgmr.msra.gmra.mxu0 %vm745_vm1, %v839_v45 }
 0x1a0   : > { %3008 = vmatpush3.xpose.msk.msra.mxu1 %vm745_vm1, %v1433_v46  ;;  %3009 = vmatprep.mubr.msk.f32.mxu1 %vm3352_vm2, %v3351_v12 }
 0x1a3   : > { %3010 = vmatmul.mubr.msk.f32.vlgmr.msra.gmra.mxu1 %vm745_vm1, %v840_v47 }
 0x253   : > { %v959_v49 = vpop.f32.mrf.mxu1 }
 0x254   : > { %v1511_v50 = vadd.f32 %v1509_v48, %v959_v49 }
 0x255   : > { %v2976_v51 = vpop.f32.mrf.mxu1 }
 0x256   : > { %v1520_v52 = vsel %vm1519_vm3, %v1511_v50, -inf }
 0x257   : > { %v1115_v53 = vpop.f32.mrf.mxu0  ;;  %1521 = vmax.xlane.f32.xlu0 %v1520_v52  ;;  %v1037_v54 = vpop.f32.mrf.mxu1 }
 0x258   : > { %v1513_v55 = vadd.f32 %v1509_v48, %v1115_v53  ;;  %v1512_v56 = vadd.f32 %v1509_v48, %v1037_v54 }
 0x259   : > { %v2981_v57 = vpop.f32.mrf.mxu1  ;;  %v2986_v58 = vpop.f32.mrf.mxu0 }
 0x25a   : > { %v1526_v60 = vsel %vm1519_vm3, %v1513_v55, -inf  ;;  %v1523_v61 = vsel %vm1519_vm3, %v1512_v56, -inf }
 0x25b   : > { %v1271_v62 = vpop.f32.mrf.mxu0  ;;  %1527 = vmax.xlane.f32.xlu0 %v1526_v60  ;;  %1524 = vmax.xlane.f32.xlu1 %v1523_v61  ;;  %v1193_v63 = vpop.f32.mrf.mxu1 }
 0x25c   : > { %v1515_v0 = vadd.f32 %v1510_v59, %v1271_v62  ;;  %v1514_v1 = vadd.f32 %v1509_v48, %v1193_v63 }
 0x25d   : > { %v2991_v2 = vpop.f32.mrf.mxu1  ;;  %v2996_v3 = vpop.f32.mrf.mxu0 }
 0x25e   : > { %v1532_v5 = vsel %vm1519_vm3, %v1515_v0, -inf  ;;  %v1529_v8 = vsel %vm1519_vm3, %v1514_v1, -inf }
 0x25f   : > { %v1427_v13 = vpop.f32.mrf.mxu0  ;;  %1533 = vmax.xlane.f32.xlu1 %v1532_v5  ;;  %1530 = vmax.xlane.f32.xlu0 %v1529_v8  ;;  %v1349_v14 = vpop.f32.mrf.mxu1 }
 0x260   : > { %v1517_v15 = vadd.f32 %v1510_v59, %v1427_v13  ;;  %v1516_v16 = vadd.f32 %v1510_v59, %v1349_v14 }
 0x261   : > { %v3001_v17 = vpop.f32.mrf.mxu1  ;;  %v3006_v19 = vpop.f32.mrf.mxu0 }
 0x262   : > { %v1538_v20 = vsel %vm1519_vm3, %v1517_v15, -inf  ;;  %v1535_v21 = vsel %vm1519_vm3, %v1516_v16, -inf }
 0x263   : > { %1539 = vmax.xlane.f32.xlu1 %v1538_v20  ;;  %1536 = vmax.xlane.f32.xlu0 %v1535_v21  ;;  %v1505_v22 = vpop.f32.mrf.mxu1 }
 0x264   : > { %v1518_v24 = vadd.f32 %v1510_v59, %v1505_v22 }
 0x265   : > { %v3011_v25 = vpop.f32.mrf.mxu1 }
 0x266   : > { %v1541_v26 = vsel %vm1519_vm3, %v1518_v24, -inf }
 0x267   : > { %1542 = vmax.xlane.f32.xlu0 %v1541_v26 }
 0x274   : > { %865 = vrot.lane.b32.xlu1 %v3580_v7, %s3354_s0 }
 0x2e0   : > { %v1522_v27 = vpop.xlane.xlu0 %1521 }
 0x2e1   : > { %v1544_v28 = vsub.f32 %v1511_v50, %v1522_v27 }
 0x2e3   : > { %v1552_v29 = vmul.f32 1.442695, %v1544_v28 }
 0x2e4   : > { %v1528_v30 = vpop.xlane.xlu0 %1527  ;;  %v1525_v31 = vpop.xlane.xlu1 %1524 }
 0x2e5   : > { %3155 = vpow2.f32 %v1552_v29  ;;  %v1546_v32 = vsub.f32 %v1513_v55, %v1528_v30  ;;  %v1545_v33 = vsub.f32 %v1512_v56, %v1525_v31 }
 0x2e7   : > { %v1556_v34 = vmul.f32 1.442695, %v1546_v32  ;;  %v1554_v35 = vmul.f32 1.442695, %v1545_v33 }
 0x2e8   : > { %v1534_v36 = vpop.xlane.xlu1 %1533  ;;  %v1531_v37 = vpop.xlane.xlu0 %1530 }
 0x2e9   : > { %3157 = vpow2.f32 %v1556_v34  ;;  %v1548_v38 = vsub.f32 %v1515_v0, %v1534_v36  ;;  %v1547_v39 = vsub.f32 %v1514_v1, %v1531_v37 }
 0x2ea   : > { %3159 = vpow2.f32 %v1554_v35 }
 0x2eb   : > { %v1560_v40 = vmul.f32 1.442695, %v1548_v38  ;;  %v1558_v41 = vmul.f32 1.442695, %v1547_v39 }
 0x2ec   : > { %v1540_v42 = vpop.xlane.xlu1 %1539  ;;  %v1537_v7 = vpop.xlane.xlu0 %1536 }
 0x2ed   : > { %3161 = vpow2.f32 %v1560_v40  ;;  %v1550_v43 = vsub.f32 %v1517_v15, %v1540_v42  ;;  %v1549_v44 = vsub.f32 %v1516_v16, %v1537_v7 }
 0x2ee   : > { %3163 = vpow2.f32 %v1558_v41 }
 0x2ef   : > { %v1564_v45 = vmul.f32 1.442695, %v1550_v43  ;;  %v1562_v46 = vmul.f32 1.442695, %v1549_v44 }
 0x2f0   : > { %v866_v47 = vpop.permute.xlu1 %865  ;;  %v1543_v48 = vpop.xlane.xlu0 %1542 }
 0x2f1   : > { %3165 = vpow2.f32 %v1564_v45  ;;  %v3673_v49 = vmul.f32 %v866_v47, %v3606_v18  ;;  %v3676_v50 = vmul.f32 %v866_v47, %v3610_v23  ;;  %v1551_v51 = vsub.f32 %v1518_v24, %v1543_v48 }
 0x2f2   : > { %v3156_v52 = vpop.eup %3155  ;;  %3167 = vpow2.f32 %v1562_v46 }
 0x2f3   : > { %v1566_v53 = vmul.f32 1.442695, %v1551_v51  ;;  %v1568_v54 = vsel %vm1519_vm3, %v3156_v52, 0.0 }
 0x2f4   : > { %1569 = vadd.xlane.f32.xlu1 %v1568_v54 }
 0x2f5   : > { %3169 = vpow2.f32 %v1566_v53 }
 0x2f6   : > { %v3158_v55 = vpop.eup %3157 }
 0x2f7   : > { %v3160_v56 = vpop.eup %3159  ;;  %v1574_v57 = vsel %vm1519_vm3, %v3158_v55, 0.0 }
 0x2f8   : > { %1575 = vadd.xlane.f32.xlu1 %v1574_v57  ;;  %v1571_v58 = vsel %vm1519_vm3, %v3160_v56, 0.0 }
 0x2f9   : > { %1572 = vadd.xlane.f32.xlu0 %v1571_v58 }
 0x2fa   : > { %v3162_v59 = vpop.eup %3161 }
 0x2fb   : > { %v3164_v60 = vpop.eup %3163  ;;  %v1580_v61 = vsel %vm1519_vm3, %v3162_v59, 0.0 }
 0x2fc   : > { %1581 = vadd.xlane.f32.xlu1 %v1580_v61  ;;  %v1577_v62 = vsel %vm1519_vm3, %v3164_v60, 0.0 }
 0x2fd   : > { %1578 = vadd.xlane.f32.xlu0 %v1577_v62 }
 0x2fe   : > { %v3166_v63 = vpop.eup %3165 }
 0x2ff   : > { %v3168_v0 = vpop.eup %3167  ;;  %v1586_v1 = vsel %vm1519_vm3, %v3166_v63, 0.0 }
 0x300   : > { %1587 = vadd.xlane.f32.xlu1 %v1586_v1  ;;  %v1583_v2 = vsel %vm1519_vm3, %v3168_v0, 0.0 }
 0x301   : > { %1584 = vadd.xlane.f32.xlu0 %v1583_v2 }
 0x302   : > { %v3170_v3 = vpop.eup %3169 }
 0x303   : > { %v1589_v5 = vsel %vm1519_vm3, %v3170_v3, 0.0 }
 0x305   : > { %1590 = vadd.xlane.f32.xlu0 %v1589_v5 }
 0x311   : > { %869 = vrot.lane.b32.xlu1 %v3578_v6, %s3354_s0 }
 0x315   : > { %871 = vrot.lane.b32.xlu1 %v3585_v9, %s3354_s0 }
 0x31b   : > { %867 = vrot.lane.b32.xlu0 %v3587_v10, %s3354_s0 }
 0x37d   : > { %v1570_v8 = vpop.xlane.xlu1 %1569 }
 0x37e   : > { %3171 = vrcp.f32 %v1570_v8 }
 0x381   : > { %v1576_v13 = vpop.xlane.xlu1 %1575 }
 0x382   : > { %3173 = vrcp.f32 %v1576_v13  ;;  %v1573_v14 = vpop.xlane.xlu0 %1572 }
 0x383   : > { %3175 = vrcp.f32 %v1573_v14 }
 0x385   : > { %v1582_v15 = vpop.xlane.xlu1 %1581 }
 0x386   : > { %3177 = vrcp.f32 %v1582_v15  ;;  %v1579_v16 = vpop.xlane.xlu0 %1578 }
 0x387   : > { %3179 = vrcp.f32 %v1579_v16 }
 0x389   : > { %v1588_v17 = vpop.xlane.xlu1 %1587 }
 0x38a   : > { %3181 = vrcp.f32 %v1588_v17  ;;  %v1585_v19 = vpop.xlane.xlu0 %1584 }
 0x38b   : > { %v3172_v6 = vpop.eup %3171  ;;  %3183 = vrcp.f32 %v1585_v19 }
 0x38c   : > { %v1600_v20 = vmul.f32 %v3172_v6, %v3156_v52 }
 0x38d   : > { %v870_v9 = vpop.permute.xlu1 %869 }
 0x38e   : > { %v879_v21 = vmul.f32 %v870_v9, %v3606_v18  ;;  %v883_v10 = vmul.f32 %v870_v9, %v3610_v23  ;;  %v1591_v22 = vpop.xlane.xlu0 %1590 }
 0x38f   : > { %v3174_v24 = vpop.eup %3173  ;;  %3185 = vrcp.f32 %v1591_v22 }
 0x390   : > { %v3176_v25 = vpop.eup %3175  ;;  %v1602_v26 = vmul.f32 %v3174_v24, %v3158_v55 }
 0x391   : > { %v1601_v27 = vmul.f32 %v3176_v25, %v3160_v56  ;;  %v872_v28 = vpop.permute.xlu1 %871 }
 0x392   : > { %v880_v29 = vmul.f32 %v872_v28, %v3606_v18  ;;  %v884_v30 = vmul.f32 %v872_v28, %v3610_v23  ;;  %v868_v31 = vpop.permute.xlu0 %867 }
 0x393   : > { %v3178_v32 = vpop.eup %3177  ;;  %v878_v33 = vmul.f32 %v868_v31, %v3606_v18  ;;  %v882_v34 = vmul.f32 %v868_v31, %v3610_v23 }
 0x394   : > { %v3180_v35 = vpop.eup %3179  ;;  %v1604_v36 = vmul.f32 %v3178_v32, %v3162_v59 }
 0x395   : > { %v1603_v37 = vmul.f32 %v3180_v35, %v3164_v60 }
 0x397   : > { %v3182_v38 = vpop.eup %3181 }
 0x398   : > { %v3184_v39 = vpop.eup %3183  ;;  %v1606_v40 = vmul.f32 %v3182_v38, %v3166_v63 }
 0x399   : > { %v1605_v41 = vmul.f32 %v3184_v39, %v3168_v0  ;;  %1611 = sbr.rel (%p2869_p4) target bundleno = 930 (0x3a2), region = 100 }
 0x39c   : > { %v3186_v42 = vpop.eup %3185 }
 0x39d   : > { %v1607_v7 = vmul.f32 %v3186_v42, %v3170_v3 }
 0x39e   : > { %1612 = vst.msk [vmem:[#allocation9] sm:$0xff] %vm1519_vm3, %v1600_v20  ;;  %1613 = vst.msk [vmem:[#allocation9 + $0x8] sm:$0xff] %vm1519_vm3, %v1601_v27 }
 0x39f   : > { %1614 = vst.msk [vmem:[#allocation9 + $0x10] sm:$0xff] %vm1519_vm3, %v1602_v26  ;;  %1615 = vst.msk [vmem:[#allocation9 + $0x18] sm:$0xff] %vm1519_vm3, %v1603_v37 }
 0x3a0   : > { %1616 = vst.msk [vmem:[#allocation9 + $0x20] sm:$0xff] %vm1519_vm3, %v1604_v36  ;;  %1617 = vst.msk [vmem:[#allocation9 + $0x28] sm:$0xff] %vm1519_vm3, %v1605_v41 }
 0x3a1   : > { %1618 = vst.msk [vmem:[#allocation9 + $0x30] sm:$0xff] %vm1519_vm3, %v1606_v40  ;;  %1619 = vst.msk [vmem:[#allocation9 + $0x38] sm:$0xff] %vm1519_vm3, %v1607_v7 }
 0x3a2 PF: > { %1621 = vrot.lane.b32.xlu0 %v3673_v49, %s3354_s0  ;;  %1775 = vrot.lane.b32.xlu1 %v879_v21, %s3354_s0  ;;  %v2245_v49 = vld [vmem:[%s3528_s25 + $0x18] sm:$0xff]  ;;  %v2243_v51 = vld [vmem:[%s3528_s25 + $0x8] sm:$0xff]  ;;  %s3885_s21 = scalar_lea.vmem %s3854_s6, %s3513_s27  ;;  %s3886_s3 = scalar_lea.vmem %s3856_s8, %s3513_s27  ;;  %vm2490_vm4 = vcmask 523264  }
 0x3a3   : > { %3012 = vmatprep.subr.mxu0 %v3351_v12  ;;  %3014 = vmatprep.mubr.msk.f32.mxu0 %vm3352_vm2, %v3351_v12  ;;  %v2242_v52 = vld [vmem:[%s3528_s25] sm:$0xff]  ;;  %v2382_v35 = vld [vmem:[%s3537_s15 + $0x8] sm:$0xff]  ;;  %v2481_v38 = vld [vmem:[%s3547_s29 + $0x30] sm:$0xff]  ;;  %p3129_p6 = scmp.eq.s32.totalorder %s3450_s22, 1 }
 0x3a4   : > { %3017 = vmatprep.subr.mxu1 %v3351_v12  ;;  %3019 = vmatprep.mubr.msk.f32.mxu1 %vm3352_vm2, %v3351_v12  ;;  %v2878_v17 = vld [vmem:[%s3885_s21] ss:$0 sm:$0xff]  ;;  %v2480_v39 = vld [vmem:[%s3547_s29 + $0x28] sm:$0xff] }
 0x3a6   : > { %1698 = vrot.lane.b32.xlu0 %v878_v33, %s3354_s0  ;;  %1852 = vrot.lane.b32.xlu1 %v880_v29, %s3354_s0  ;;  %v2384_v33 = vld [vmem:[%s3537_s15 + $0x18] sm:$0xff] }
 0x3aa   : > { %1929 = vrot.lane.b32.xlu0 %v3676_v50, %s3354_s0  ;;  %2006 = vrot.lane.b32.xlu1 %v882_v34, %s3354_s0  ;;  %v2244_v50 = vld [vmem:[%s3528_s25 + $0x10] sm:$0xff] }
 0x3ab   : > { %v2383_v34 = vld [vmem:[%s3537_s15 + $0x10] sm:$0xff] }
 0x3ae   : > { %2083 = vrot.lane.b32.xlu0 %v883_v10, %s3354_s0  ;;  %2160 = vrot.lane.b32.xlu1 %v884_v30, %s3354_s0 }
 0x414   : > { %v1622_v18 = vpop.permute.xlu0 %1621  ;;  %v1776_v23 = vpop.permute.xlu1 %1775 }
 0x415   : > { %3013 = vmatpush3.msra.mxu0 %v1622_v18 }
 0x416   : > { %3022 = vmatprep.subr.mxu0 %v3351_v12  ;;  %3015 = vmatmul.mubr.msk.f32.vlgmr.msra.gmra.mxu0 %vm1519_vm3, %v1600_v20 }
 0x417   : > { %3023 = vmatpush3.msra.mxu0 %v1776_v23  ;;  %3024 = vmatprep.mubr.msk.f32.mxu0 %vm3352_vm2, %v3351_v12 }
 0x418   : > { %v1699_v43 = vpop.permute.xlu0 %1698  ;;  %v1853_v44 = vpop.permute.xlu1 %1852  ;;  %3032 = vmatprep.subr.mxu0 %v3351_v12 }
 0x419   : > { %3018 = vmatpush3.msra.mxu1 %v1699_v43 }
 0x41a   : > { %3020 = vmatmul.mubr.msk.f32.vlgmr.msra.gmra.mxu1 %vm1519_vm3, %v1601_v27  ;;  %3027 = vmatprep.subr.mxu1 %v3351_v12 }
 0x41b   : > { %3025 = vmatmul.mubr.msk.f32.vlgmr.msra.gmra.mxu0 %vm1519_vm3, %v1602_v26  ;;  %3028 = vmatpush3.msra.mxu1 %v1853_v44 }
 0x41c   : > { %v1930_v45 = vpop.permute.xlu0 %1929  ;;  %3029 = vmatprep.mubr.msk.f32.mxu1 %vm3352_vm2, %v3351_v12  ;;  %v2007_v46 = vpop.permute.xlu1 %2006  ;;  %3034 = vmatprep.mubr.msk.f32.mxu0 %vm3352_vm2, %v3351_v12 }
 0x41d   : > { %3033 = vmatpush3.msra.mxu0 %v1930_v45  ;;  %3037 = vmatprep.subr.mxu1 %v3351_v12  ;;  %v2881_v45 = vld [vmem:[%s713_s2] ss:$0 sm:$0xff] }
 0x41e   : > { %3030 = vmatmul.mubr.msk.f32.vlgmr.msra.gmra.mxu1 %vm1519_vm3, %v1603_v37  ;;  %3042 = vmatprep.subr.mxu0 %v3351_v12  ;;  %v2482_v37 = vld [vmem:[%s3547_s29 + $0x38] sm:$0xff] }
 0x41f   : > { %3035 = vmatmul.mubr.msk.f32.vlgmr.msra.gmra.mxu0 %vm1519_vm3, %v1604_v36  ;;  %3038 = vmatpush3.msra.mxu1 %v2007_v46  ;;  %v2381_v36 = vld [vmem:[%s3537_s15] sm:$0xff] }
 0x420   : > { %v2084_v47 = vpop.permute.xlu0 %2083  ;;  %3039 = vmatprep.mubr.msk.f32.mxu1 %vm3352_vm2, %v3351_v12  ;;  %v2161_v48 = vpop.permute.xlu1 %2160  ;;  %3044 = vmatprep.mubr.msk.f32.mxu0 %vm3352_vm2, %v3351_v12 }
 0x421   : > { %3043 = vmatpush3.msra.mxu0 %v2084_v47  ;;  %3047 = vmatprep.subr.mxu1 %v3351_v12  ;;  %v2882_v47 = vld [vmem:[%s716_s7] ss:$0 sm:$0xff] }
 0x422   : > { %3040 = vmatmul.mubr.msk.f32.vlgmr.msra.gmra.mxu1 %vm1519_vm3, %v1605_v41  ;;  %3052 = vmatprep.subr.mxu0 %v2245_v49 }
 0x423   : > { %3045 = vmatmul.mubr.msk.f32.vlgmr.msra.gmra.mxu0 %vm1519_vm3, %v1606_v40  ;;  %3048 = vmatpush3.msra.mxu1 %v2161_v48  ;;  %v2479_v40 = vld [vmem:[%s3547_s29 + $0x20] sm:$0xff] }
 0x424   : > { %3049 = vmatprep.mubr.msk.f32.mxu1 %vm3352_vm2, %v3351_v12  ;;  %3053 = vmatpush3.msra.mxu0 %v2245_v49 }
 0x425   : > { %3054 = vmatprep.subr.mxu0 %v2244_v50  ;;  %3063 = vmatprep.subr.mxu1 %v2384_v33 }
 0x426   : > { %3050 = vmatmul.mubr.msk.f32.vlgmr.msra.gmra.mxu1 %vm1519_vm3, %v1607_v7  ;;  %3055 = vmatpush3.msra.mxu0 %v2244_v50 }
 0x427   : > { %3056 = vmatprep.subr.mxu0 %v2243_v51  ;;  %3064 = vmatpush3.msra.mxu1 %v2384_v33 }
 0x428   : > { %3057 = vmatpush3.msra.mxu0 %v2243_v51  ;;  %3065 = vmatprep.subr.mxu1 %v2383_v34 }
 0x429   : > { %3058 = vmatprep.subr.mxu0 %v2242_v52  ;;  %3066 = vmatpush3.msra.mxu1 %v2383_v34 }
 0x42a   : > { %3059 = vmatpush3.msra.mxu0 %v2242_v52  ;;  %3067 = vmatprep.subr.mxu1 %v2382_v35 }
 0x42b   : > { %3068 = vmatpush3.msra.mxu1 %v2382_v35  ;;  %3074 = vmatprep.subr.mxu0 %v2482_v37 }
 0x42c   : > { %3069 = vmatprep.subr.mxu1 %v2381_v36 }
 0x42d   : > { %3070 = vmatpush3.msra.mxu1 %v2381_v36 }
 0x4d6   : > { %v1693_v53 = vpop.f32.mrf.mxu0 }
 0x4d8   : > { %v3016_v54 = vpop.f32.mrf.mxu0 }
 0x4d9   : > { %v2478_v54 = vld [vmem:[%s3547_s29 + $0x18] sm:$0xff] }
 0x4da   : > { %v1770_v55 = vpop.f32.mrf.mxu1 }
 0x4db   : > { %v2236_v56 = vadd.f32 %v1770_v55, %v1693_v53  ;;  %v1847_v57 = vpop.f32.mrf.mxu0  ;;  %v2477_v55 = vld [vmem:[%s3547_s29 + $0x10] sm:$0xff] }
 0x4dc   : > { %v3021_v12 = vpop.f32.mrf.mxu1 }
 0x4dd   : > { %v2238_v58 = vadd.f32 %v2236_v56, %v1847_v57  ;;  %v3026_v59 = vpop.f32.mrf.mxu0  ;;  %v2476_v56 = vld [vmem:[%s3547_s29 + $0x8] sm:$0xff]  ;;  %v2475_v57 = vld [vmem:[%s3547_s29] sm:$0xff]  ;;  %s3355_s29 = smov [#allocation9]  }
 0x4de   : > { %v1924_v60 = vpop.f32.mrf.mxu1  ;;  %v2883_v12 = vld [vmem:[%s3886_s3] ss:$0 sm:$0xff] }
 0x4df   : > { %v2240_v61 = vadd.f32 %v2238_v58, %v1924_v60  ;;  %v2001_v62 = vpop.f32.mrf.mxu0 }
 0x4e0   : > { %v3031_v63 = vpop.f32.mrf.mxu1 }
 0x4e1   : > { %v3036_v0 = vpop.f32.mrf.mxu0  ;;  %3060 = vmatprep.mubr.msk.f32.mxu0 %vm745_vm1, %v2240_v61 }
 0x4e2   : > { %v2078_v1 = vpop.f32.mrf.mxu1  ;;  %v2886_v0 = vld [vmem:[%s710_s19] ss:$0 sm:$0xff]  ;;  %s2639_s19 = sshll.u32 %s3355_s29, 4  ;;  %s2640_s19 = int_to_ptr.vmem [resolvable:$true] %s2639_s19 }
 0x4e3   : > { %v2237_v2 = vadd.f32 %v2078_v1, %v2001_v62  ;;  %v2155_v3 = vpop.f32.mrf.mxu0  ;;  %s3273_s16 = scalar_lea.vmem %s2640_s19, 1024  ;;  %p3280_p12 = scmp.lt.s32.totalorder %s2640_s19, %s2640_s19 }
 0x4e4   : > { %v3041_v5 = vpop.f32.mrf.mxu1  ;;  %p3274_p9 = scmp.ne.s32.totalorder %s2640_s19, %s3273_s16  ;;  %p3281_p13 = scmp.lt.s32.totalorder %s3273_s16, %s3273_s16 }
 0x4e5   : > { %v2239_v8 = vadd.f32 %v2237_v2, %v2155_v3  ;;  %v3046_v13 = vpop.f32.mrf.mxu0 }
 0x4e6   : > { %v2232_v14 = vpop.f32.mrf.mxu1  ;;  %p3275_p11 = pnand %p3274_p9, %p3129_p6  ;;  %p3282_p0 = por %p3281_p13, %p3280_p12 }
 0x4e7   : > { %v2241_v15 = vadd.f32 %v2239_v8, %v2232_v14 }
 0x4e8   : > { %v3051_v16 = vpop.f32.mrf.mxu1  ;;  %p3276_p10 = pneg %p3275_p11 }
 0x4e9   : > { %3061 = vmatmul.mubr.msk.f32.vlgmr.msra.gmra.mxu0 %vm745_vm1, %v2241_v15 }
 0x4ea   : > { %3075 = vmatpush3.msra.mxu0 %v2482_v37  ;;  %p3283_p2 = pnand %p3282_p0, %p3276_p10 }
 0x4eb   : > { %3076 = vmatprep.subr.mxu0 %v2481_v38 }
 0x4ec   : > { %3077 = vmatpush3.msra.mxu0 %v2481_v38 }
 0x4ed   : > { %3078 = vmatprep.subr.mxu0 %v2480_v39 }
 0x4ee   : > { %3079 = vmatpush3.msra.mxu0 %v2480_v39 }
 0x4ef   : > { %3080 = vmatprep.subr.mxu0 %v2479_v40 }
 0x4f0   : > { %3081 = vmatpush3.msra.mxu0 %v2479_v40 }
 0x4f1   : > { %3082 = vmatprep.subr.mxu0 %v2478_v54 }
 0x4f2   : > { %3083 = vmatpush3.msra.mxu0 %v2478_v54 }
 0x4f3   : > { %3084 = vmatprep.subr.mxu0 %v2477_v55 }
 0x4f4   : > { %3085 = vmatpush3.msra.mxu0 %v2477_v55 }
 0x4f5   : > { %3086 = vmatprep.subr.mxu0 %v2476_v56 }
 0x4f6   : > { %3087 = vmatpush3.msra.mxu0 %v2476_v56 }
 0x4f7   : > { %3088 = vmatprep.subr.mxu0 %v2475_v57 }
 0x4f8   : > { %3089 = vmatpush3.msra.mxu0 %v2475_v57 }
 0x5a9   : > { %v3062_v19 = vpop.f32.mrf.mxu0 }
 0x5aa   : > { %v2331_v6 = vadd.f32 %v3062_v19, %v2878_v17 }
 0x5ab   : > { %v2325_v20 = vpop.f32.mrf.mxu0 }
 0x5ac   : > { %v2335_v9 = vadd.f32 %v2331_v6, %v3589_v11  ;;  %v2326_v21 = vadd.f32 %v2878_v17, %v2325_v20 }
 0x5ae   : > { %v2334_v10 = vadd.f32 %v2326_v21, %v3573_v4  ;;  %v2339_v22 = vsel %vm745_vm1, %v2335_v9, 0.0 }
 0x5af   : > { %2340 = vadd.xlane.f32.xlu1 %v2339_v22 }
 0x5b0   : > { %v2336_v24 = vsel %vm745_vm1, %v2334_v10, 0.0 }
 0x5b1   : > { %2337 = vadd.xlane.f32.xlu0 %v2336_v24 }
 0x638   : > { %v2341_v25 = vpop.xlane.xlu1 %2340 }
 0x639   : > { %v2344_v26 = vmul.f32 0.03125, %v2341_v25 }
 0x63a   : > { %v2338_v27 = vpop.xlane.xlu0 %2337 }
 0x63b   : > { %v2343_v28 = vmul.f32 0.03125, %v2338_v27  ;;  %v2346_v29 = vsub.f32 %v2335_v9, %v2344_v26 }
 0x63d   : > { %v2345_v30 = vsub.f32 %v2334_v10, %v2343_v28  ;;  %v2348_v4 = vmul.f32 %v2346_v29, %v2346_v29 }
 0x63f   : > { %v2347_v11 = vmul.f32 %v2345_v30, %v2345_v30  ;;  %v2352_v32 = vsel %vm745_vm1, %v2348_v4, 0.0 }
 0x641   : > { %v2349_v31 = vsel %vm745_vm1, %v2347_v11, 0.0 }
 0x642   : > { %2350 = vadd.xlane.f32.xlu0 %v2349_v31 }
 0x646   : > { %2353 = vadd.xlane.f32.xlu0 %v2352_v32 }
 0x6cb   : > { %v2351_v41 = vpop.xlane.xlu0 %2350 }
 0x6cc   : > { %v2355_v42 = vmul.f32 0.03125, %v2351_v41 }
 0x6ce   : > { %v2357_v7 = vadd.f32 1e-12, %v2355_v42 }
 0x6cf   : > { %v2354_v18 = vpop.xlane.xlu0 %2353 }
 0x6d0   : > { %3187 = vrsqrt.f32 %v2357_v7  ;;  %v2356_v23 = vmul.f32 0.03125, %v2354_v18 }
 0x6d2   : > { %v2358_v43 = vadd.f32 1e-12, %v2356_v23 }
 0x6d4   : > { %3189 = vrsqrt.f32 %v2358_v43 }
 0x6dd   : > { %v3188_v44 = vpop.eup %3187 }
 0x6de   : > { %v2361_v46 = vmul.f32 %v3188_v44, %v2345_v30 }
 0x6e0   : > { %v2370_v48 = vmul.f32 %v2881_v45, %v2361_v46 }
 0x6e1   : > { %v3190_v49 = vpop.eup %3189 }
 0x6e2   : > { %v2362_v50 = vmul.f32 %v3190_v49, %v2346_v29  ;;  %v2379_v51 = vadd.f32 %v2882_v47, %v2370_v48 }
 0x6e4   : > { %v2371_v52 = vmul.f32 %v2881_v45, %v2362_v50  ;;  %3071 = vmatprep.mubr.msk.f32.mxu1 %vm745_vm1, %v2379_v51 }
 0x6e6   : > { %v2380_v53 = vadd.f32 %v2882_v47, %v2371_v52 }
 0x6e8   : > { %3072 = vmatmul.mubr.msk.f32.vlgmr.msra.gmra.mxu1 %vm745_vm1, %v2380_v53 }
 0x7a8   : > { %v3073_v58 = vpop.f32.mrf.mxu1 }
 0x7a9   : > { %v2470_v59 = vadd.f32 %v3073_v58, %v2883_v12 }
 0x7aa   : > { %v2464_v60 = vpop.f32.mrf.mxu1 }
 0x7ab   : > { %v2465_v61 = vadd.f32 %v2883_v12, %v2464_v60  ;;  %v2474_v63 = vmax.f32 %v2470_v59, 0.0 }
 0x7ad   : > { %v2473_v62 = vmax.f32 %v2465_v61, 0.0 }
 0x7af   : > { %3090 = vmatprep.mubr.msk.f32.mxu0 %vm2490_vm4, %v2473_v62 }
 0x7b0   : > { %3091 = vmatmul.mubr.msk.f32.vlgmr.msra.gmra.mxu0 %vm2490_vm4, %v2474_v63 }
 0x870   : > { %v3092_v1 = vpop.f32.mrf.mxu0 }
 0x871   : > { %v2569_v2 = vadd.f32 %v3092_v1, %v2886_v0 }
 0x872   : > { %v2563_v3 = vpop.f32.mrf.mxu0 }
 0x873   : > { %v2564_v5 = vadd.f32 %v2886_v0, %v2563_v3  ;;  %v2573_v8 = vadd.f32 %v2569_v2, %v2380_v53 }
 0x875   : > { %v2577_v13 = vsel %vm745_vm1, %v2573_v8, 0.0  ;;  %v2572_v14 = vadd.f32 %v2564_v5, %v2379_v51 }
 0x876   : > { %2578 = vadd.xlane.f32.xlu0 %v2577_v13 }
 0x877   : > { %v2574_v15 = vsel %vm745_vm1, %v2572_v14, 0.0 }
 0x878   : > { %2575 = vadd.xlane.f32.xlu1 %v2574_v15 }
 0x8ff   : > { %v2579_v16 = vpop.xlane.xlu0 %2578 }
 0x900   : > { %v2581_v17 = vmul.f32 0.03125, %v2579_v16 }
 0x901   : > { %v2576_v19 = vpop.xlane.xlu1 %2575 }
 0x902   : > { %v2583_v6 = vsub.f32 %v2573_v8, %v2581_v17  ;;  %v2580_v20 = vmul.f32 0.03125, %v2576_v19 }
 0x904   : > { %v2582_v9 = vsub.f32 %v2572_v14, %v2580_v20  ;;  %v2585_v21 = vmul.f32 %v2583_v6, %v2583_v6 }
 0x906   : > { %v2589_v10 = vsel %vm745_vm1, %v2585_v21, 0.0  ;;  %v2584_v22 = vmul.f32 %v2582_v9, %v2582_v9 }
 0x907   : > { %2590 = vadd.xlane.f32.xlu0 %v2589_v10 }
 0x908   : > { %v2586_v24 = vsel %vm745_vm1, %v2584_v22, 0.0 }
 0x909   : > { %2587 = vadd.xlane.f32.xlu1 %v2586_v24 }
 0x90a   : > { %3286 = shalt.err (!%p3283_p2)
}
 0x90b   : > { %s3356_s26 = smov 128   ;;  %s3357_s24 = smov 8   ;;  %v2889_v31 = vld [vmem:[%s719_s18] ss:$0 sm:$0xff] }
 0x90c   : > { %s3887_s20 = sld [smem:[#allocation23_spill]]  ;;  %v2890_v33 = vld [vmem:[%s722_s17] ss:$0 sm:$0xff]  ;;  %s3358_s30 = smov [#allocation8]  }
 0x90d   : > { %s2626_s7 = sshll.u32 %s3358_s30, 4  ;;  %s2627_s7 = int_to_ptr.vmem [resolvable:$true] %s2626_s7 }
 0x90e   : > { %s3297_s18 = scalar_lea.vmem %s2627_s7, 256  ;;  %p3304_p7 = scmp.lt.s32.totalorder %s2627_s7, %s2627_s7 }
 0x90f   : > { %p3298_p1 = scmp.ne.s32.totalorder %s2627_s7, %s3297_s18  ;;  %p3305_p3 = scmp.lt.s32.totalorder %s3297_s18, %s3297_s18 }
 0x911   : > { %p3299_p5 = pnand %p3298_p1, %p3129_p6  ;;  %p3306_p4 = por %p3305_p3, %p3304_p7 }
 0x912   : > { %3108 = dma.vmem_to_hbm [thread:$0]  (%p3129_p6), %s2640_s19, 1024, %s3887_s20, [#allocation10], %s3356_s26, %s3356_s26, %s3357_s24  }
 0x913   : > { %p3300_p8 = pneg %p3299_p5 }
 0x915   : > { %p3307_p9 = pnand %p3306_p4, %p3300_p8 }
 0x990   : > { %v2591_v25 = vpop.xlane.xlu0 %2590 }
 0x991   : > { %v2593_v26 = vmul.f32 0.03125, %v2591_v25 }
 0x992   : > { %v2588_v27 = vpop.xlane.xlu1 %2587 }
 0x993   : > { %v2595_v28 = vadd.f32 1e-12, %v2593_v26  ;;  %v2592_v29 = vmul.f32 0.03125, %v2588_v27 }
 0x995   : > { %3191 = vrsqrt.f32 %v2595_v28  ;;  %v2594_v30 = vadd.f32 1e-12, %v2592_v29 }
 0x997   : > { %3193 = vrsqrt.f32 %v2594_v30 }
 0x9a2   : > { %v3192_v11 = vpop.eup %3191 }
 0x9a3   : > { %v2599_v4 = vmul.f32 %v3192_v11, %v2583_v6 }
 0x9a4   : > { %v3194_v32 = vpop.eup %3193 }
 0x9a5   : > { %v2598_v34 = vmul.f32 %v3194_v32, %v2582_v9  ;;  %v2608_v35 = vmul.f32 %v2889_v31, %v2599_v4 }
 0x9a7   : > { %v2607_v36 = vmul.f32 %v2889_v31, %v2598_v34  ;;  %v2617_v37 = vadd.f32 %v2890_v33, %v2608_v35 }
 0x9a9   : > { %v2616_v38 = vadd.f32 %v2890_v33, %v2607_v36  ;;  %2619 = vst.msk [vmem:[#allocation8 + $0x8] sm:$0xff] %vm745_vm1, %v2617_v37 }
 0x9ab   : > { %2618 = vst.msk [vmem:[#allocation8] sm:$0xff] %vm745_vm1, %v2616_v38 }
 0x9ac   : > { %3310 = shalt.err (!%p3307_p9)
}
 0x9ad   : > { %s3888_s2 = sld [smem:[#allocation22_spill]] }
 0x9b3   : > { %3106 = dma.vmem_to_hbm [thread:$0]  (%p3129_p6), %s2627_s7, 256, %s3888_s2, [#allocation4], %s3356_s26, %s3356_s26, %s3357_s24  }
 0x9b4   : > { %3334 = dma.done.wait (%p3129_p6), [#allocation4], 256  }
 0x9b5   : > { %3336 = vsyncadd (%p3129_p6), [#allocation4], 4294967040 }
 0x9b6   : > { %3338 = dma.done.wait (%p3129_p6), [#allocation10], 1024  }
 0x9b7   : > { %3340 = vsyncadd (%p3129_p6), [#allocation10], 4294966272 }
 0x9b8 PF: > { %s3889_s3 = sld [smem:[#allocation15_spill]] }
 0x9be   : > { %s31_s21 = sadd.s32 1, %s3889_s3  }
 0x9bf   : > { %p28_p11 = scmp.ge.s32.totalorder %s31_s21, 4  }
 0x9c1   :  { %30 = sbr.rel (!%p28_p11) target bundleno = 13 (0xd), region = 169 }
 0x9c6   :  { %2659 = vsyncpa [#allocation3], 1 }
 0x9c7   :  { %2661 = vsyncpa [#allocation3 + $0x1], 1 }
 0x9c8   :  { %2662 = vsyncpa [#allocation6], 1 }
 0x9c9   :  { %2663 = vsyncpa [#allocation4], 1 }
 0x9ca   :  { %2665 = vsyncpa [#allocation4 + $0x1], 1 }
 0x9cb   :  { %2666 = vsyncpa [#allocation10], 1 }

</bundles_post_ra>
